<compile_context>
chip_gen: v6e
topology: v6e:2x2x1
jax: 0.10.0
libtpu: 0.0.40
codegen_flags: <defaults>
</compile_context>

<pallas_src>
import functools
import math

import jax
import jax.numpy as jnp
from jax.experimental import pallas as pl
from jax.experimental.pallas import tpu as pltpu


def _round_up(x, m):
    return ((x + m - 1) // m) * m


def _cdiv(a, b):
    return (a + b - 1) // b


# ----------------------------------------------------------------------------
# Path A: fused-im2col conv (stride == 1).  Grid = (batch, output-row-band).
# ----------------------------------------------------------------------------
def _fused_conv_kernel(x_ref, w_ref, b_ref, o_ref, *, kh, kw, toh, ow, c):
    """One (batch, row-band) tile of a stride-1 conv with im2col fused in VMEM.

    x_ref: (1, Hp, Wp, C)      bf16 padded NHWC image (resident across bands)
    w_ref: (KH*KW, C, O_pad)   bf16 ReLU'd weight, tap-major (resident)
    b_ref: (1, O_pad)          f32 bias
    o_ref: (1, TOH*OW, O_pad)  f32 NHWC-flattened output row-band (lane-dense)
    """
    o_pad = o_ref.shape[-1]
    oh0 = pl.program_id(1) * toh
    acc = jnp.zeros((toh * ow, o_pad), jnp.float32)
    for i in range(kh):
        for j in range(kw):
            # (TOH, OW, C) window for tap (i, j).  H is a major dim so the
            # dynamic offset is plain addressing; the static j shift on the
            # sublane dim is a cheap in-VMEM relayout (no HBM traffic).
            slab = x_ref[0, pl.ds(oh0 + i, toh), pl.ds(j, ow), :]
            acc += jnp.dot(slab.reshape(toh * ow, c), w_ref[i * kw + j],
                           preferred_element_type=jnp.float32)
    # Bias added exactly once, f32 accumulation throughout.
    o_ref[...] = (acc + b_ref[...])[None]


def _conv2d_fused_stride1(x, w_pos, bias, padding, OH, OW):
    N, C, H, W = x.shape
    O, _, KH, KW = w_pos.shape
    O_pad = _round_up(O, 128)           # lane-dense output stores

    # Row-band size: ~512 output rows per step, but keep >=2 bands when OH
    # allows so v7x's two TensorCores both get parallel (n, band) tiles.
    TOH = max(1, min(OH, 512 // max(OW, 1)))
    if OH >= 2:
        TOH = min(TOH, _cdiv(OH, 2))
    # Keep TOH*OW a multiple of 8 so partial-OH bands satisfy the (8,128) rule.
    g = 8 // math.gcd(OW, 8)
    TOH = _round_up(TOH, g)

    def vmem_bytes(toh):
        oh_pad = _round_up(OH, toh)
        hp = oh_pad + KH - 1
        wp = W + 2 * padding
        x_b = hp * _round_up(wp, 16) * _round_up(C, 128) * 2
        w_b = KH * KW * _round_up(C, 16) * O_pad * 2
        o_b = _round_up(toh * OW, 8) * O_pad * 4
        tmp = (_round_up(toh * OW, 8) * O_pad * 4
               + _round_up(toh * OW, 16) * _round_up(C, 128) * 2)
        return 2 * (x_b + w_b + o_b) + 2 * tmp + (1 << 20)

    # Budget against the smallest default scoped VMEM (16 MiB on v5e; v6e/v7x
    # default 32 MiB, v7x physical 64 MiB) with headroom.
    budget = 12 * (1 << 20)
    while TOH > g and vmem_bytes(TOH) > budget:
        TOH = _round_up(max(g, TOH // 2), g)
    if vmem_bytes(TOH) > budget:
        return None                      # image/weight too big -> im2col path

    OH_pad = _round_up(OH, TOH)
    n_bands = OH_pad // TOH
    Hp = OH_pad + KH - 1                 # stride 1: covers the last band's halo
    Wp = W + 2 * padding

    x_nhwc = jnp.transpose(x, (0, 2, 3, 1)).astype(jnp.bfloat16)
    x_p = jnp.pad(x_nhwc, ((0, 0), (padding, Hp - H - padding),
                           (padding, padding), (0, 0)))
    # (O, C, KH, KW) -> (KH*KW, C, O_pad); ReLU already applied in the wrapper.
    w_mat = jnp.transpose(w_pos, (2, 3, 1, 0)).reshape(KH * KW, C, O)
    w_mat = jnp.pad(w_mat, ((0, 0), (0, 0), (0, O_pad - O))).astype(jnp.bfloat16)
    b_mat = jnp.pad(bias.astype(jnp.float32), (0, O_pad - O)).reshape(1, O_pad)

    kernel = functools.partial(_fused_conv_kernel,
                               kh=KH, kw=KW, toh=TOH, ow=OW, c=C)
    out = pl.pallas_call(
        kernel,
        out_shape=jax.ShapeDtypeStruct((N, OH_pad * OW, O_pad), jnp.float32),
        grid_spec=pltpu.PrefetchScalarGridSpec(
            num_scalar_prefetch=0,
            grid=(N, n_bands),
            in_specs=[
                # Whole padded image per batch; index ignores the band axis so
                # it is DMA'd once per n and stays resident across all bands.
                pl.BlockSpec((1, Hp, Wp, C), lambda n, m: (n, 0, 0, 0)),
                # Weight + bias: constant index -> fetched once, resident.
                pl.BlockSpec((KH * KW, C, O_pad), lambda n, m: (0, 0, 0)),
                pl.BlockSpec((1, O_pad), lambda n, m: (0, 0)),
            ],
            out_specs=pl.BlockSpec((1, TOH * OW, O_pad), lambda n, m: (n, m, 0)),
        ),
        compiler_params=pltpu.CompilerParams(
            dimension_semantics=("parallel", "parallel")),
        cost_estimate=pl.CostEstimate(
            flops=2 * N * OH_pad * OW * KH * KW * C * O_pad,
            transcendentals=0,
            bytes_accessed=(x_p.size * 2 + w_mat.size * 2 + b_mat.size * 4
                            + N * OH_pad * OW * O_pad * 4)),
    )(x_p, w_mat, b_mat)

    out = out.reshape(N, OH_pad, OW, O_pad)[:, :OH, :, :O]
    # NCHW to match the PyTorch module's output convention.
    return jnp.transpose(out, (0, 3, 1, 2))


# ----------------------------------------------------------------------------
# Path B: tiled im2col matmul (stride > 1, or fused path over VMEM budget).
# ----------------------------------------------------------------------------
def _mm_bias_kernel(p_ref, w_ref, b_ref, o_ref):
    """out = bias + patches @ relu_w, accumulated directly in the f32 output
    block (its index is constant across the k axis), so no scratch is needed
    and the bias is written exactly once at k == 0."""
    @pl.when(pl.program_id(2) == 0)
    def _init():
        o_ref[...] = jnp.broadcast_to(b_ref[...], o_ref.shape)

    o_ref[...] += jnp.dot(p_ref[...], w_ref[...],
                          preferred_element_type=jnp.float32)


def _im2col_nhwc(x_nhwc, kh, kw, stride, padding):
    """(N, H, W, C) -> (N*OH*OW, KH*KW*C); feature index = (i*KW + j)*C + c."""
    N, H, W, C = x_nhwc.shape
    xp = jnp.pad(x_nhwc, ((0, 0), (padding, padding), (padding, padding), (0, 0)))
    OH = (H + 2 * padding - kh) // stride + 1
    OW = (W + 2 * padding - kw) // stride + 1
    cols = []
    for i in range(kh):
        for j in range(kw):
            cols.append(xp[:, i:i + stride * OH:stride, j:j + stride * OW:stride, :])
    patches = jnp.concatenate(cols, axis=-1)               # (N, OH, OW, KH*KW*C)
    return patches.reshape(N * OH * OW, kh * kw * C), OH, OW


def _conv2d_im2col(x, w_pos, bias, stride, padding, OH, OW):
    N, C, H, W = x.shape
    O, _, KH, KW = w_pos.shape

    x_nhwc = jnp.transpose(x, (0, 2, 3, 1)).astype(jnp.bfloat16)
    patches, _, _ = _im2col_nhwc(x_nhwc, KH, KW, stride, padding)
    M, Kd = patches.shape

    w_mat = jnp.transpose(w_pos, (2, 3, 1, 0)).reshape(Kd, O).astype(jnp.bfloat16)

    # ---- tiles: large, balanced, MXU-width aligned.  Worst case
    # (TM=512, TK=1024, TN=512, double-buffered) is ~6 MiB, fits every chip's
    # default scoped VMEM.
    if O <= 512:
        O_pad = _round_up(O, 128)
        TN = O_pad                      # single j step; weight/bias not re-streamed
    else:
        O_pad = _round_up(O, 256)
        TN = 256                        # fills the 256-wide MXU on v6e/v7x

    TK_MAX = 1024
    if Kd <= TK_MAX:
        nk, TK, K_pad = 1, Kd, Kd       # no K padding; weight resident if TN==O_pad
    else:
        nk = _cdiv(Kd, TK_MAX)
        TK = _round_up(_cdiv(Kd, nk), 128)   # balanced K tiles (<128 wasted rows/step)
        K_pad = nk * TK

    nm = _cdiv(M, 512)
    if nm == 1 and M >= 256:
        nm = 2                          # keep >=2 parallel M tiles for v7x's 2 TCs
    TM = _round_up(_cdiv(M, nm), 16)    # 16-row alignment for bf16 sublane packing
    M_pad = nm * TM

    patches_p = jnp.pad(patches, ((0, M_pad - M), (0, K_pad - Kd)))
    w_p = jnp.pad(w_mat, ((0, K_pad - Kd), (0, O_pad - O)))
    bias_p = jnp.pad(bias.astype(jnp.float32), (0, O_pad - O)).reshape(1, O_pad)

    grid = (M_pad // TM, O_pad // TN, nk)
    # TODO(synk): if profiling shows exposed DMA on the patches stream, add
    # pipeline_mode=pl.Buffered(3) on the patches BlockSpec only.
    out = pl.pallas_call(
        _mm_bias_kernel,
        out_shape=jax.ShapeDtypeStruct((M_pad, O_pad), jnp.float32),
        grid_spec=pltpu.PrefetchScalarGridSpec(
            num_scalar_prefetch=0,
            grid=grid,
            in_specs=[
                pl.BlockSpec((TM, TK), lambda i, j, k: (i, k)),
                pl.BlockSpec((TK, TN), lambda i, j, k: (k, j)),
                pl.BlockSpec((1, TN), lambda i, j, k: (0, j)),
            ],
            out_specs=pl.BlockSpec((TM, TN), lambda i, j, k: (i, j)),
        ),
        compiler_params=pltpu.CompilerParams(
            dimension_semantics=("parallel", "parallel", "arbitrary")),
        cost_estimate=pl.CostEstimate(
            flops=2 * M_pad * K_pad * O_pad,
            transcendentals=0,
            bytes_accessed=(patches_p.size * 2 + w_p.size * 2
                            + bias_p.size * 4 + M_pad * O_pad * 4)),
    )(patches_p, w_p, bias_p)

    out = out[:M, :O].reshape(N, OH, OW, O)
    return jnp.transpose(out, (0, 3, 1, 2))


# ----------------------------------------------------------------------------
# Public entry point: NonNegativeConv2d.forward
# ----------------------------------------------------------------------------
@functools.partial(jax.jit, static_argnames=("stride", "padding"))
def non_negative_conv2d(x, weight_raw, bias, *, stride=1, padding=0):
    """conv2d(x, relu(weight_raw), bias, stride, padding).

    x:          (N, C, H, W)    float32
    weight_raw: (O, C, KH, KW)  float32 (raw weights)
    bias:       (O,) float32 or None
    returns:    (N, O, OH, OW)  float32 (NCHW, matching the PyTorch module)
    """
    N, C, H, W = x.shape
    O, Cw, KH, KW = weight_raw.shape
    assert C == Cw
    if bias is None:
        bias = jnp.zeros((O,), jnp.float32)

    # Non-negativity constraint hoisted out of the kernel: XLA fuses the ReLU
    # into the weight transpose/cast (one tiny pass) instead of the kernel
    # re-ReLU'ing the same tile once per grid step.
    w_pos = jnp.maximum(weight_raw, 0.0)

    OH = (H + 2 * padding - KH) // stride + 1
    OW = (W + 2 * padding - KW) // stride + 1

    out = None
    if stride == 1:
        out = _conv2d_fused_stride1(x, w_pos, bias, padding, OH, OW)
    if out is None:
        # TODO(synk): fuse im2col for stride > 1 too (phase-decomposed
        # space-to-depth input) instead of materializing patches in HBM.
        out = _conv2d_im2col(x, w_pos, bias, stride, padding, OH, OW)
    return out


if __name__ == "__main__":
    key = jax.random.PRNGKey(0)
    kx, kw_, kb = jax.random.split(key, 3)

    # Small shapes consistent with the module: batch=2, in=4, out=8, 16x16, k=3.
    N, C, H, W = 2, 4, 16, 16
    O, K = 8, 3

    x = jax.random.normal(kx, (N, C, H, W), dtype=jnp.float32)
    weight_raw = jax.random.normal(kw_, (O, C, K, K), dtype=jnp.float32) * 0.03
    bias = jax.random.normal(kb, (O,), dtype=jnp.float32) * 0.03

    def ref_conv(xv, wv, bv, stride, padding):
        y = jax.lax.conv_general_dilated(
            xv, jnp.maximum(wv, 0.0),
            window_strides=(stride, stride),
            padding=[(padding, padding), (padding, padding)],
            dimension_numbers=("NCHW", "OIHW", "NCHW"))
        return y + bv.reshape(1, -1, 1, 1)

    # stride=1, padding=1 -> fused-im2col Pallas path.
    y1 = non_negative_conv2d(x, weight_raw, bias, stride=1, padding=1)
    jax.block_until_ready(y1)
    assert y1.shape == (N, O, H, W)
    assert jnp.max(jnp.abs(y1 - ref_conv(x, weight_raw, bias, 1, 1))) < 2e-2

    # stride=2, padding=1 -> tiled im2col matmul Pallas path.
    y2 = non_negative_conv2d(x, weight_raw, bias, stride=2, padding=1)
    jax.block_until_ready(y2)
    assert y2.shape == (N, O, 8, 8)
    assert jnp.max(jnp.abs(y2 - ref_conv(x, weight_raw, bias, 2, 1))) < 2e-2

    print("KERNEL_OK")
</pallas_src>

<mosaic_0001>
module attributes {stable_mosaic.version = 11 : i64} {
  func.func @_fused_conv_kernel(%arg0: i32, %arg1: i32, %arg2: memref<1x18x18x4xbf16, #tpu.memory_space<vmem>>, %arg3: memref<9x4x128xbf16, #tpu.memory_space<vmem>>, %arg4: memref<1x128xf32, #tpu.memory_space<vmem>>, %arg5: memref<1x128x128xf32, #tpu.memory_space<vmem>>) attributes {dimension_semantics = [#tpu.dimension_semantics<parallel>, #tpu.dimension_semantics<parallel>], iteration_bounds = array<i64: 2, 2>, scalar_prefetch = 0 : i64, scratch_operands = 0 : i64, tpu.core_type = #tpu.core_type<tc>, window_params = [{transform_indices = @transform_0, window_bounds = array<i64: 1, 18, 18, 4>}, {pipeline_mode = #tpu.pipeline_mode<synchronous>, transform_indices = @transform_1, window_bounds = array<i64: 9, 4, 128>}, {pipeline_mode = #tpu.pipeline_mode<synchronous>, transform_indices = @transform_2, window_bounds = array<i64: 1, 128>}, {transform_indices = @transform_3, window_bounds = array<i64: 1, 128, 128>}]} {
    %c8_i32 = arith.constant 8 : i32
    %0 = arith.muli %arg1, %c8_i32 : i32
    %cst = arith.constant 0.000000e+00 : f32
    %1 = vector.broadcast %cst : f32 to vector<128x128xf32>
    %c0_i32 = arith.constant 0 : i32
    %2 = arith.addi %0, %c0_i32 : i32
    %c0 = arith.constant 0 : index
    %3 = arith.index_cast %2 : i32 to index
    %c0_0 = arith.constant 0 : index
    %c0_1 = arith.constant 0 : index
    %4 = vector.load %arg2[%c0, %3, %c0_0, %c0_1] : memref<1x18x18x4xbf16, #tpu.memory_space<vmem>>, vector<1x8x16x4xbf16>
    %5 = vector.shape_cast %4 : vector<1x8x16x4xbf16> to vector<8x16x4xbf16>
    %6 = vector.shape_cast %5 : vector<8x16x4xbf16> to vector<128x4xbf16>
    %c0_2 = arith.constant 0 : index
    %c0_3 = arith.constant 0 : index
    %c0_4 = arith.constant 0 : index
    %7 = vector.load %arg3[%c0_2, %c0_3, %c0_4] : memref<9x4x128xbf16, #tpu.memory_space<vmem>>, vector<1x4x128xbf16>
    %8 = vector.shape_cast %7 : vector<1x4x128xbf16> to vector<4x128xbf16>
    %cst_5 = arith.constant dense<0.000000e+00> : vector<128x128xf32>
    %9 = tpu.matmul %6, %8, %cst_5 {dimension_numbers = #tpu.dot_dimension_numbers<[1], [0], [0], [1], [0, 0, 1, 1], [], []>} : vector<128x4xbf16>, vector<4x128xbf16>, vector<128x128xf32> -> vector<128x128xf32>
    %10 = arith.addf %1, %9 : vector<128x128xf32>
    %c0_i32_6 = arith.constant 0 : i32
    %11 = arith.addi %0, %c0_i32_6 : i32
    %c0_7 = arith.constant 0 : index
    %12 = arith.index_cast %11 : i32 to index
    %c1 = arith.constant 1 : index
    %c0_8 = arith.constant 0 : index
    %13 = vector.load %arg2[%c0_7, %12, %c1, %c0_8] : memref<1x18x18x4xbf16, #tpu.memory_space<vmem>>, vector<1x8x16x4xbf16>
    %14 = vector.shape_cast %13 : vector<1x8x16x4xbf16> to vector<8x16x4xbf16>
    %15 = vector.shape_cast %14 : vector<8x16x4xbf16> to vector<128x4xbf16>
    %c1_9 = arith.constant 1 : index
    %c0_10 = arith.constant 0 : index
    %c0_11 = arith.constant 0 : index
    %16 = vector.load %arg3[%c1_9, %c0_10, %c0_11] : memref<9x4x128xbf16, #tpu.memory_space<vmem>>, vector<1x4x128xbf16>
    %17 = vector.shape_cast %16 : vector<1x4x128xbf16> to vector<4x128xbf16>
    %cst_12 = arith.constant dense<0.000000e+00> : vector<128x128xf32>
    %18 = tpu.matmul %15, %17, %cst_12 {dimension_numbers = #tpu.dot_dimension_numbers<[1], [0], [0], [1], [0, 0, 1, 1], [], []>} : vector<128x4xbf16>, vector<4x128xbf16>, vector<128x128xf32> -> vector<128x128xf32>
    %19 = arith.addf %10, %18 : vector<128x128xf32>
    %c0_i32_13 = arith.constant 0 : i32
    %20 = arith.addi %0, %c0_i32_13 : i32
    %c0_14 = arith.constant 0 : index
    %21 = arith.index_cast %20 : i32 to index
    %c2 = arith.constant 2 : index
    %c0_15 = arith.constant 0 : index
    %22 = vector.load %arg2[%c0_14, %21, %c2, %c0_15] : memref<1x18x18x4xbf16, #tpu.memory_space<vmem>>, vector<1x8x16x4xbf16>
    %23 = vector.shape_cast %22 : vector<1x8x16x4xbf16> to vector<8x16x4xbf16>
    %24 = vector.shape_cast %23 : vector<8x16x4xbf16> to vector<128x4xbf16>
    %c2_16 = arith.constant 2 : index
    %c0_17 = arith.constant 0 : index
    %c0_18 = arith.constant 0 : index
    %25 = vector.load %arg3[%c2_16, %c0_17, %c0_18] : memref<9x4x128xbf16, #tpu.memory_space<vmem>>, vector<1x4x128xbf16>
    %26 = vector.shape_cast %25 : vector<1x4x128xbf16> to vector<4x128xbf16>
    %cst_19 = arith.constant dense<0.000000e+00> : vector<128x128xf32>
    %27 = tpu.matmul %24, %26, %cst_19 {dimension_numbers = #tpu.dot_dimension_numbers<[1], [0], [0], [1], [0, 0, 1, 1], [], []>} : vector<128x4xbf16>, vector<4x128xbf16>, vector<128x128xf32> -> vector<128x128xf32>
    %28 = arith.addf %19, %27 : vector<128x128xf32>
    %c1_i32 = arith.constant 1 : i32
    %29 = arith.addi %0, %c1_i32 : i32
    %c0_20 = arith.constant 0 : index
    %30 = arith.index_cast %29 : i32 to index
    %c0_21 = arith.constant 0 : index
    %c0_22 = arith.constant 0 : index
    %31 = vector.load %arg2[%c0_20, %30, %c0_21, %c0_22] : memref<1x18x18x4xbf16, #tpu.memory_space<vmem>>, vector<1x8x16x4xbf16>
    %32 = vector.shape_cast %31 : vector<1x8x16x4xbf16> to vector<8x16x4xbf16>
    %33 = vector.shape_cast %32 : vector<8x16x4xbf16> to vector<128x4xbf16>
    %c3 = arith.constant 3 : index
    %c0_23 = arith.constant 0 : index
    %c0_24 = arith.constant 0 : index
    %34 = vector.load %arg3[%c3, %c0_23, %c0_24] : memref<9x4x128xbf16, #tpu.memory_space<vmem>>, vector<1x4x128xbf16>
    %35 = vector.shape_cast %34 : vector<1x4x128xbf16> to vector<4x128xbf16>
    %cst_25 = arith.constant dense<0.000000e+00> : vector<128x128xf32>
    %36 = tpu.matmul %33, %35, %cst_25 {dimension_numbers = #tpu.dot_dimension_numbers<[1], [0], [0], [1], [0, 0, 1, 1], [], []>} : vector<128x4xbf16>, vector<4x128xbf16>, vector<128x128xf32> -> vector<128x128xf32>
    %37 = arith.addf %28, %36 : vector<128x128xf32>
    %c1_i32_26 = arith.constant 1 : i32
    %38 = arith.addi %0, %c1_i32_26 : i32
    %c0_27 = arith.constant 0 : index
    %39 = arith.index_cast %38 : i32 to index
    %c1_28 = arith.constant 1 : index
    %c0_29 = arith.constant 0 : index
    %40 = vector.load %arg2[%c0_27, %39, %c1_28, %c0_29] : memref<1x18x18x4xbf16, #tpu.memory_space<vmem>>, vector<1x8x16x4xbf16>
    %41 = vector.shape_cast %40 : vector<1x8x16x4xbf16> to vector<8x16x4xbf16>
    %42 = vector.shape_cast %41 : vector<8x16x4xbf16> to vector<128x4xbf16>
    %c4 = arith.constant 4 : index
    %c0_30 = arith.constant 0 : index
    %c0_31 = arith.constant 0 : index
    %43 = vector.load %arg3[%c4, %c0_30, %c0_31] : memref<9x4x128xbf16, #tpu.memory_space<vmem>>, vector<1x4x128xbf16>
    %44 = vector.shape_cast %43 : vector<1x4x128xbf16> to vector<4x128xbf16>
    %cst_32 = arith.constant dense<0.000000e+00> : vector<128x128xf32>
    %45 = tpu.matmul %42, %44, %cst_32 {dimension_numbers = #tpu.dot_dimension_numbers<[1], [0], [0], [1], [0, 0, 1, 1], [], []>} : vector<128x4xbf16>, vector<4x128xbf16>, vector<128x128xf32> -> vector<128x128xf32>
    %46 = arith.addf %37, %45 : vector<128x128xf32>
    %c1_i32_33 = arith.constant 1 : i32
    %47 = arith.addi %0, %c1_i32_33 : i32
    %c0_34 = arith.constant 0 : index
    %48 = arith.index_cast %47 : i32 to index
    %c2_35 = arith.constant 2 : index
    %c0_36 = arith.constant 0 : index
    %49 = vector.load %arg2[%c0_34, %48, %c2_35, %c0_36] : memref<1x18x18x4xbf16, #tpu.memory_space<vmem>>, vector<1x8x16x4xbf16>
    %50 = vector.shape_cast %49 : vector<1x8x16x4xbf16> to vector<8x16x4xbf16>
    %51 = vector.shape_cast %50 : vector<8x16x4xbf16> to vector<128x4xbf16>
    %c5 = arith.constant 5 : index
    %c0_37 = arith.constant 0 : index
    %c0_38 = arith.constant 0 : index
    %52 = vector.load %arg3[%c5, %c0_37, %c0_38] : memref<9x4x128xbf16, #tpu.memory_space<vmem>>, vector<1x4x128xbf16>
    %53 = vector.shape_cast %52 : vector<1x4x128xbf16> to vector<4x128xbf16>
    %cst_39 = arith.constant dense<0.000000e+00> : vector<128x128xf32>
    %54 = tpu.matmul %51, %53, %cst_39 {dimension_numbers = #tpu.dot_dimension_numbers<[1], [0], [0], [1], [0, 0, 1, 1], [], []>} : vector<128x4xbf16>, vector<4x128xbf16>, vector<128x128xf32> -> vector<128x128xf32>
    %55 = arith.addf %46, %54 : vector<128x128xf32>
    %c2_i32 = arith.constant 2 : i32
    %56 = arith.addi %0, %c2_i32 : i32
    %c0_40 = arith.constant 0 : index
    %57 = arith.index_cast %56 : i32 to index
    %c0_41 = arith.constant 0 : index
    %c0_42 = arith.constant 0 : index
    %58 = vector.load %arg2[%c0_40, %57, %c0_41, %c0_42] : memref<1x18x18x4xbf16, #tpu.memory_space<vmem>>, vector<1x8x16x4xbf16>
    %59 = vector.shape_cast %58 : vector<1x8x16x4xbf16> to vector<8x16x4xbf16>
    %60 = vector.shape_cast %59 : vector<8x16x4xbf16> to vector<128x4xbf16>
    %c6 = arith.constant 6 : index
    %c0_43 = arith.constant 0 : index
    %c0_44 = arith.constant 0 : index
    %61 = vector.load %arg3[%c6, %c0_43, %c0_44] : memref<9x4x128xbf16, #tpu.memory_space<vmem>>, vector<1x4x128xbf16>
    %62 = vector.shape_cast %61 : vector<1x4x128xbf16> to vector<4x128xbf16>
    %cst_45 = arith.constant dense<0.000000e+00> : vector<128x128xf32>
    %63 = tpu.matmul %60, %62, %cst_45 {dimension_numbers = #tpu.dot_dimension_numbers<[1], [0], [0], [1], [0, 0, 1, 1], [], []>} : vector<128x4xbf16>, vector<4x128xbf16>, vector<128x128xf32> -> vector<128x128xf32>
    %64 = arith.addf %55, %63 : vector<128x128xf32>
    %c2_i32_46 = arith.constant 2 : i32
    %65 = arith.addi %0, %c2_i32_46 : i32
    %c0_47 = arith.constant 0 : index
    %66 = arith.index_cast %65 : i32 to index
    %c1_48 = arith.constant 1 : index
    %c0_49 = arith.constant 0 : index
    %67 = vector.load %arg2[%c0_47, %66, %c1_48, %c0_49] : memref<1x18x18x4xbf16, #tpu.memory_space<vmem>>, vector<1x8x16x4xbf16>
    %68 = vector.shape_cast %67 : vector<1x8x16x4xbf16> to vector<8x16x4xbf16>
    %69 = vector.shape_cast %68 : vector<8x16x4xbf16> to vector<128x4xbf16>
    %c7 = arith.constant 7 : index
    %c0_50 = arith.constant 0 : index
    %c0_51 = arith.constant 0 : index
    %70 = vector.load %arg3[%c7, %c0_50, %c0_51] : memref<9x4x128xbf16, #tpu.memory_space<vmem>>, vector<1x4x128xbf16>
    %71 = vector.shape_cast %70 : vector<1x4x128xbf16> to vector<4x128xbf16>
    %cst_52 = arith.constant dense<0.000000e+00> : vector<128x128xf32>
    %72 = tpu.matmul %69, %71, %cst_52 {dimension_numbers = #tpu.dot_dimension_numbers<[1], [0], [0], [1], [0, 0, 1, 1], [], []>} : vector<128x4xbf16>, vector<4x128xbf16>, vector<128x128xf32> -> vector<128x128xf32>
    %73 = arith.addf %64, %72 : vector<128x128xf32>
    %c2_i32_53 = arith.constant 2 : i32
    %74 = arith.addi %0, %c2_i32_53 : i32
    %c0_54 = arith.constant 0 : index
    %75 = arith.index_cast %74 : i32 to index
    %c2_55 = arith.constant 2 : index
    %c0_56 = arith.constant 0 : index
    %76 = vector.load %arg2[%c0_54, %75, %c2_55, %c0_56] : memref<1x18x18x4xbf16, #tpu.memory_space<vmem>>, vector<1x8x16x4xbf16>
    %77 = vector.shape_cast %76 : vector<1x8x16x4xbf16> to vector<8x16x4xbf16>
    %78 = vector.shape_cast %77 : vector<8x16x4xbf16> to vector<128x4xbf16>
    %c8 = arith.constant 8 : index
    %c0_57 = arith.constant 0 : index
    %c0_58 = arith.constant 0 : index
    %79 = vector.load %arg3[%c8, %c0_57, %c0_58] : memref<9x4x128xbf16, #tpu.memory_space<vmem>>, vector<1x4x128xbf16>
    %80 = vector.shape_cast %79 : vector<1x4x128xbf16> to vector<4x128xbf16>
    %cst_59 = arith.constant dense<0.000000e+00> : vector<128x128xf32>
    %81 = tpu.matmul %78, %80, %cst_59 {dimension_numbers = #tpu.dot_dimension_numbers<[1], [0], [0], [1], [0, 0, 1, 1], [], []>} : vector<128x4xbf16>, vector<4x128xbf16>, vector<128x128xf32> -> vector<128x128xf32>
    %82 = arith.addf %73, %81 : vector<128x128xf32>
    %c0_60 = arith.constant 0 : index
    %c0_61 = arith.constant 0 : index
    %83 = vector.load %arg4[%c0_60, %c0_61] : memref<1x128xf32, #tpu.memory_space<vmem>>, vector<1x128xf32>
    %84 = vector.broadcast %83 : vector<1x128xf32> to vector<128x128xf32>
    %85 = arith.addf %82, %84 : vector<128x128xf32>
    %86 = vector.shape_cast %85 : vector<128x128xf32> to vector<1x128x128xf32>
    %c0_62 = arith.constant 0 : index
    %c0_63 = arith.constant 0 : index
    %c0_64 = arith.constant 0 : index
    %87 = vector.load %arg5[%c0_62, %c0_63, %c0_64] : memref<1x128x128xf32, #tpu.memory_space<vmem>>, vector<1x128x128xf32>
    tpu.vector_store %arg5[%c0_62, %c0_63, %c0_64], %86 {strides = array<i32>} : memref<1x128x128xf32, #tpu.memory_space<vmem>>, vector<1x128x128xf32>,
    return
  }
  func.func @transform_0(%arg0: i32, %arg1: i32) -> (i32, i32, i32, i32) {
    %c0_i32 = arith.constant 0 : i32
    %c0_i32_0 = arith.constant 0 : i32
    %c0_i32_1 = arith.constant 0 : i32
    %c0_i32_2 = arith.constant 0 : i32
    return %arg0, %c0_i32, %c0_i32_0, %c0_i32_1 : i32, i32, i32, i32
  }
  func.func @transform_1(%arg0: i32, %arg1: i32) -> (i32, i32, i32) {
    %c0_i32 = arith.constant 0 : i32
    %c0_i32_0 = arith.constant 0 : i32
    %c0_i32_1 = arith.constant 0 : i32
    %c0_i32_2 = arith.constant 0 : i32
    return %c0_i32, %c0_i32_0, %c0_i32_1 : i32, i32, i32
  }
  func.func @transform_2(%arg0: i32, %arg1: i32) -> (i32, i32) {
    %c0_i32 = arith.constant 0 : i32
    %c0_i32_0 = arith.constant 0 : i32
    %c0_i32_1 = arith.constant 0 : i32
    return %c0_i32, %c0_i32_0 : i32, i32
  }
  func.func @transform_3(%arg0: i32, %arg1: i32) -> (i32, i32, i32) {
    %c0_i32 = arith.constant 0 : i32
    %c0_i32_0 = arith.constant 0 : i32
    return %arg0, %arg1, %c0_i32 : i32, i32, i32
  }
}

</mosaic_0001>

<bundles_post_ra>
// kernel: non_negative_conv2d.1
= control target key start
LH: loop header
LB: loop body
LE: loop exit
PB: predicated region body
PF: predicated region fallthrough
CT: control target
= control target key end

     0   :  { %s3465_s12 = smov 0   ;;  %s3467_s13 = smov 0   ;;  %s4642_s0 = inlined_call_operand.vmem [shape: bf16[2,18,18,4], index: 0, kind: input, shape index: {}]   ;;  %s4643_s1 = inlined_call_operand.vmem [shape: bf16[9,4,128], index: 1, kind: input, shape index: {}]   ;;  %s4644_s2 = inlined_call_operand.vmem [shape: f32[1,128], index: 2, kind: input, shape index: {}]   ;;  %s4645_s3 = inlined_call_operand.vmem [shape: f32[2,256,128], index: 3, kind: output, shape index: {}]  }
   0x1   :  { %s3469_s14 = smov 0   ;;  %s3471_s15 = smov 0  }
   0x2   :  { %s3473_s16 = smov 0  }
   0x3 LB: > { %s22_s17 = sadd.s32 1, %s3435_s14  ;;  %s25_s18 = sadd.s32 1, %s3439_s15  ;;  %s3443_s16 = sphi %s3473_s16, %s13_s16   ;;  %s3439_s15 = sphi %s3471_s15, %s4693_s15   ;;  %s3435_s14 = sphi %s3469_s14, %s4692_s14   ;;  %s3431_s13 = sphi %s3467_s13, %s4691_s13   ;;  %s3427_s12 = sphi %s3465_s12, %s4690_s12  }
   0x4   : > { %p23_p0 = scmp.ge.s32.totalorder %s22_s17, 2  ;;  %p2797_p1 = scmp.ge.s32.totalorder %s3443_s16, 1 }
   0x5   : > { %p151_p2 = scmp.lt.s32.totalorder %s3443_s16, 5 }
   0x6   : > { %s4695_s17 = smov (%p23_p0, %s22_s17), 0  ;;  %s4697_s18 = smov (!%p23_p0, %s25_s18), %s3439_s15 }
   0x7   : > { %p152_p3 = pnand %p2797_p1, %p151_p2  ;;  %p27_p4 = scmp.ge.s32.totalorder %s4697_s18, 2 }
   0x9   : > { %s4699_s18 = smov (%p27_p4, %s4697_s18), 0  ;;  %155 = sbr.rel (%p152_p3) target bundleno = 396 (0x18c), region = 32 }
   0xe   : > { %v2805_v0 = vld [vmem:[%s4643_s1 + $0x2] sm:$0x3]  ;;  %vm470_vm0 = vcmask 1041408   ;;  %p179_p5 = scmp.lt.s32.totalorder %s3431_s13, 1  ;;  %v215_v2 = vld [vmem:[%s4643_s1] sm:$0x3] }
   0xf   : > { %3331 = vmatprep.subr.msk.bf16.mxu1 %vm470_vm0, %v2805_v0  ;;  %3330 = vmatprep.subr.msk.bf16.mxu0 %vm470_vm0, %v2805_v0  ;;  %v472_v1 = vsel %vm470_vm0, %v2805_v0, 0  ;;  %v2846_v3 = vld [vmem:[%s4643_s1 + $0x4] sm:$0x3]  ;;  %s3084_s25 = smul.u32 96, %s3427_s12  ;;  %vm224_vm1 = vsmask.f32 3328 }
  0x10   : > { %3329 = vmatpush3.bf16.msra.mxu1 %v472_v1  ;;  %3167 = vmatpush3.bf16.msra.mxu0 %v472_v1  ;;  %s4701_s13 = smov (!%p179_p5, %s3431_s13), 1  ;;  %vm225_vm2 = vsmask.f32 7440  ;;  %vm445_vm3 = vcmask 31744   ;;  %v3544_v15 = vsel %vm470_vm0, %v215_v2, 0  ;;  %v3564_v34 = vsel %vm470_vm0, %v2846_v3, 0 }
  0x11   : > { %3332 = vmatprep.subr.msk.bf16.mxu1 %vm470_vm0, %v215_v2  ;;  %3333 = vmatprep.subr.msk.bf16.mxu0 %vm470_vm0, %v2846_v3  ;;  %s3340_s26 = smul.u32 216, %s4701_s13  ;;  %vm3559_vm4 = vmor %vm224_vm1, %vm225_vm2  ;;  %vm759_vm5 = vcmask 1042432   ;;  %vm760_vm6 = vcmask 1046532   ;;  %s2799_s23 = sshll.u32 %s3427_s12, 4 }
  0x12   : > { %vm3695_vm7 = vmor %vm759_vm5, %vm760_vm6  ;;  %p187_p6 = scmp.lt.s32.totalorder %s2799_s23, 31  ;;  %s2800_s12 = sshll.u32 %s4701_s13, 5 }
  0x13   : > { %s183_s29 = scalar_lea.vmem %s4642_s0, %s3340_s26 }
  0x14   : > { %s3518_s30 = scalar_lea.vmem %s183_s29, %s3084_s25  ;;  %s4703_s23 = smov (!%p187_p6, %s2799_s23), 31 }
  0x15   : > { %v3521_v4 = vld [vmem:[%s3518_s30] sm:$0xf]  ;;  %v3524_v5 = vld [vmem:[%s3518_s30 + $0x4] sm:$0xf]  ;;  %v3527_v6 = vld [vmem:[%s3518_s30 + $0x8] sm:$0x1]  ;;  %s190_s24 = sadd.s32 %s2800_s12, %s4703_s23 }
  0x16   : > { %v228_v7 = vshrl.u32 %v3521_v4, 16  ;;  %v231_v8 = vshll.u32 %v3521_v4, 16  ;;  %v237_v9 = vshll.u32 %v3524_v5, 16  ;;  %v241_v10 = vshrl.u32 %v3524_v5, 16  ;;  %v3534_v11 = vld [vmem:[%s3518_s30 + $0x30] sm:$0xf] }
  0x17   : > { %v247_v12 = vshll.u32 %v3527_v6, 16  ;;  %v3538_v13 = vld [vmem:[%s3518_s30 + $0x34] sm:$0xf]  ;;  %v3541_v14 = vld [vmem:[%s3518_s30 + $0x38] sm:$0x1]  ;;  %v324_v21 = vshrl.u32 %v3534_v11, 16 }
  0x18   : > { %v230_v16 = vrot.slane %v228_v7, 4  ;;  %v233_v17 = vrot.slane %v231_v8, 5  ;;  %v239_v18 = vrot.slane %v237_v9, 5  ;;  %v243_v19 = vrot.slane %v241_v10, 4  ;;  %v3552_v28 = vld [vmem:[%s3518_s30 + $0xc] sm:$0xf] }
  0x19   : > { %v249_v20 = vrot.slane %v247_v12, 5  ;;  %v327_v22 = vshll.u32 %v3534_v11, 16  ;;  %v333_v23 = vshll.u32 %v3538_v13, 16  ;;  %v337_v26 = vshrl.u32 %v3538_v13, 16  ;;  %v3555_v29 = vld [vmem:[%s3518_s30 + $0x10] sm:$0xf] }
  0x1a   : > { %v234_v24 = vor.u32 %v233_v17, %v230_v16  ;;  %v244_v25 = vor.u32 %v243_v19, %v239_v18  ;;  %v343_v27 = vshll.u32 %v3541_v14, 16  ;;  %v326_v31 = vrot.slane %v324_v21, 4  ;;  %v3567_v40 = vld [vmem:[%s3518_s30 + $0x14] sm:$0x1]  ;;  %v3578_v52 = vld [vmem:[%s3518_s30 + $0x3c] sm:$0xf] }
  0x1b   : > { %v329_v32 = vrot.slane %v327_v22, 5  ;;  %v335_v33 = vrot.slane %v333_v23, 5  ;;  %v339_v37 = vrot.slane %v337_v26, 4  ;;  %v252_v41 = vshrl.u32 %v3552_v28, 16  ;;  %v3582_v57 = vld [vmem:[%s3518_s30 + $0x40] sm:$0xf] }
  0x1c   : > { %v235_v35 = vrot.slane %v234_v24, 4  ;;  %v245_v36 = vrot.slane %v244_v25, 4  ;;  %v345_v38 = vrot.slane %v343_v27, 5  ;;  %v255_v42 = vshll.u32 %v3552_v28, 16  ;;  %v3590_v62 = vld [vmem:[%s3518_s30 + $0x44] sm:$0x1] }
  0x1d   : > { %v330_v39 = vor.u32 %v329_v32, %v326_v31  ;;  %v261_v43 = vshll.u32 %v3555_v29, 16  ;;  %v340_v46 = vor.u32 %v339_v37, %v335_v33  ;;  %v265_v47 = vshrl.u32 %v3555_v29, 16  ;;  %v3596_v3 = vld [vmem:[%s3518_s30 + $0x18] sm:$0xf]  ;;  %v3603_v19 = vld [vmem:[%s3518_s30 + $0x1c] sm:$0xf] }
  0x1e   : > { %v240_v44 = vsel %vm3559_vm4, %v235_v35, %v239_v18  ;;  %v250_v45 = vsel %vm3559_vm4, %v245_v36, %v249_v20  ;;  %v254_v50 = vrot.slane %v252_v41, 4  ;;  %v257_v51 = vrot.slane %v255_v42, 5  ;;  %v3609_v23 = vld [vmem:[%s3518_s30 + $0x20] sm:$0x1]  ;;  %v3616_v32 = vld [vmem:[%s3518_s30 + $0x48] sm:$0xf] }
  0x1f   : > { %v2806_v48 = vcombine.low %v240_v44, %v250_v45  ;;  %v331_v49 = vrot.slane %v330_v39, 4  ;;  %v341_v53 = vrot.slane %v340_v46, 4  ;;  %v263_v54 = vrot.slane %v261_v43, 5  ;;  %v3627_v44 = vld [vmem:[%s3518_s30 + $0x4c] sm:$0xf]  ;;  %s2801_s13 = sshll.u32 %s190_s24, 3 }
  0x20   : > { %v267_v55 = vrot.slane %v265_v47, 4  ;;  %v271_v56 = vshll.u32 %v3567_v40, 16  ;;  %v767_v58 = vrot.slane %v3527_v6, 5  ;;  %v258_v60 = vor.u32 %v257_v51, %v254_v50  ;;  %s4547_s29 = scalar_lea.vmem %s4645_s3, %s2801_s13 }
  0x21   : > { %3168 = vmatprep.mubr.msk.bf16.mxu0 %vm445_vm3, %v2806_v48  ;;  %v336_v59 = vsel %vm3559_vm4, %v331_v49, %v335_v33  ;;  %v771_v61 = vrot.slane %v3555_v29, 5  ;;  %v346_v63 = vsel %vm3559_vm4, %v341_v53, %v345_v38  ;;  %v348_v2 = vshrl.u32 %v3578_v52, 16  ;;  %v3622_v38 = vld [vmem:[%s4643_s1 + $0x8] sm:$0x3] }
  0x22   : > { %v268_v0 = vor.u32 %v267_v55, %v263_v54  ;;  %v273_v1 = vrot.slane %v271_v56, 5  ;;  %v2810_v7 = vcombine.low %v336_v59, %v346_v63  ;;  %v259_v8 = vrot.slane %v258_v60, 4  ;;  %v3640_v63 = vld [vmem:[%s3518_s30 + $0x24] sm:$0xf] }
  0x23   : > { %v351_v9 = vshll.u32 %v3578_v52, 16  ;;  %v357_v10 = vshll.u32 %v3582_v57, 16  ;;  %v350_v16 = vrot.slane %v348_v2, 4  ;;  %v361_v17 = vshrl.u32 %v3582_v57, 16 }
  0x24   : > { %v269_v12 = vrot.slane %v268_v0, 4  ;;  %v367_v18 = vshll.u32 %v3590_v62, 16  ;;  %3176 = vmatprep.mubr.msk.bf16.mxu1 %vm445_vm3, %v2810_v7  ;;  %v264_v20 = vsel %vm3559_vm4, %v259_v8, %v263_v54  ;;  %v276_v24 = vshrl.u32 %v3596_v3, 16  ;;  %v3634_v54 = vld [vmem:[%s3518_s30 + $0x50] sm:$0x1] }
  0x25   : > { %v353_v21 = vrot.slane %v351_v9, 5  ;;  %v359_v22 = vrot.slane %v357_v10, 5  ;;  %v363_v26 = vrot.slane %v361_v17, 4  ;;  %v279_v31 = vshll.u32 %v3596_v3, 16  ;;  %v3648_v7 = vld [vmem:[%s3518_s30 + $0x28] sm:$0xf] }
  0x26   : > { %v274_v25 = vsel %vm3559_vm4, %v269_v12, %v273_v1  ;;  %v369_v27 = vrot.slane %v367_v18, 5  ;;  %v278_v36 = vrot.slane %v276_v24, 4  ;;  %v285_v37 = vshll.u32 %v3603_v19, 16  ;;  %v3653_v8 = vld [vmem:[%s4643_s1 + $0x6] sm:$0x3] }
  0x27   : > { %v2807_v33 = vcombine.low %v264_v20, %v274_v25  ;;  %v354_v35 = vor.u32 %v353_v21, %v350_v16  ;;  %v364_v39 = vor.u32 %v363_v26, %v359_v22  ;;  %v281_v41 = vrot.slane %v279_v31, 5  ;;  %v3657_v17 = vld [vmem:[%s3518_s30 + $0x2c] sm:$0x1]  ;;  %v3663_v24 = vld [vmem:[%s3518_s30 + $0x54] sm:$0xf] }
  0x28   : > { %v289_v42 = vshrl.u32 %v3603_v19, 16  ;;  %v295_v43 = vshll.u32 %v3609_v23, 16  ;;  %v287_v46 = vrot.slane %v285_v37, 5  ;;  %v372_v47 = vshrl.u32 %v3616_v32, 16 }
  0x29   : > { %3169 = vmatmul.mubr.msk.bf16.vlgmr.msra.gmra.mxu0 %vm445_vm3, %v2807_v33  ;;  %v355_v45 = vrot.slane %v354_v35, 4  ;;  %v375_v48 = vshll.u32 %v3616_v32, 16  ;;  %v365_v49 = vrot.slane %v364_v39, 4  ;;  %v282_v50 = vor.u32 %v281_v41, %v278_v36  ;;  %v3669_v33 = vld [vmem:[%s3518_s30 + $0x58] sm:$0xf] }
  0x2a   : > { %3203 = vmatpush3.bf16.msra.mxu0 %v3564_v34  ;;  %v291_v51 = vrot.slane %v289_v42, 4  ;;  %v297_v53 = vrot.slane %v295_v43, 5  ;;  %v374_v56 = vrot.slane %v372_v47, 4  ;;  %v381_v60 = vshll.u32 %v3627_v44, 16 }
  0x2b   : > { %v360_v55 = vsel %vm3559_vm4, %v355_v45, %v359_v22  ;;  %v377_v59 = vrot.slane %v375_v48, 5  ;;  %3335 = vmatprep.subr.msk.bf16.mxu0 %vm470_vm0, %v3622_v38  ;;  %v370_v34 = vsel %vm3559_vm4, %v365_v49, %v369_v27  ;;  %v283_v0 = vrot.slane %v282_v50, 4  ;;  %v735_v50 = vld [vmem:[%s3518_s30] sm:$0xe] }
  0x2c   : > { %v292_v1 = vor.u32 %v291_v51, %v287_v46  ;;  %v385_v2 = vshrl.u32 %v3627_v44, 16  ;;  %v2811_v9 = vcombine.low %v360_v55, %v370_v34  ;;  %v383_v12 = vrot.slane %v381_v60, 5 }
  0x2d   : > { %v378_v10 = vor.u32 %v377_v59, %v374_v56  ;;  %v391_v16 = vshll.u32 %v3634_v54, 16  ;;  %v288_v18 = vsel %vm3559_vm4, %v283_v0, %v287_v46  ;;  %v300_v22 = vshrl.u32 %v3640_v63, 16  ;;  %v3678_v46 = vld [vmem:[%s3518_s30 + $0x5c] sm:$0x1] }
  0x2e   : > { %v293_v20 = vrot.slane %v292_v1, 4  ;;  %v387_v21 = vrot.slane %v385_v2, 4  ;;  %3177 = vmatmul.mubr.msk.bf16.vlgmr.msra.gmra.mxu1 %vm445_vm3, %v2811_v9  ;;  %v303_v27 = vshll.u32 %v3640_v63, 16  ;;  %v309_v31 = vshll.u32 %v3648_v7, 16 }
  0x2f   : > { %v379_v25 = vrot.slane %v378_v10, 4  ;;  %v393_v26 = vrot.slane %v391_v16, 5  ;;  %3185 = vmatpush3.bf16.msra.mxu1 %v3544_v15  ;;  %v302_v37 = vrot.slane %v300_v22, 4  ;;  %v313_v39 = vshrl.u32 %v3648_v7, 16 }
  0x30   : > { %v298_v35 = vsel %vm3559_vm4, %v293_v20, %v297_v53  ;;  %v388_v36 = vor.u32 %v387_v21, %v383_v12  ;;  %v305_v43 = vrot.slane %v303_v27, 5  ;;  %v311_v45 = vrot.slane %v309_v31, 5  ;;  %3334 = vmatprep.subr.msk.bf16.mxu1 %vm470_vm0, %v3653_v8 }
  0x31   : > { %v2808_v41 = vcombine.low %v288_v18, %v298_v35  ;;  %v384_v42 = vsel %vm3559_vm4, %v379_v25, %v383_v12  ;;  %v315_v15 = vrot.slane %v313_v39, 4  ;;  %v319_v48 = vshll.u32 %v3657_v17, 16  ;;  %v736_v12 = vld [vmem:[%s3518_s30 + $0xc] sm:$0xe] }
  0x32   : > { %v389_v47 = vrot.slane %v388_v36, 4  ;;  %v396_v49 = vshrl.u32 %v3663_v24, 16  ;;  %v306_v51 = vor.u32 %v305_v43, %v302_v37  ;;  %v399_v53 = vshll.u32 %v3663_v24, 16 }
  0x33   : > { %3172 = vmatprep.mubr.msk.bf16.mxu0 %vm445_vm3, %v2808_v41  ;;  %v405_v55 = vshll.u32 %v3669_v33, 16  ;;  %v409_v56 = vshrl.u32 %v3669_v33, 16  ;;  %v316_v60 = vor.u32 %v315_v15, %v311_v45  ;;  %v321_v34 = vrot.slane %v319_v48, 5  ;;  %v737_v41 = vld [vmem:[%s3518_s30 + $0x18] sm:$0xe] }
  0x34   : > { %v394_v59 = vsel %vm3559_vm4, %v389_v47, %v393_v26  ;;  %v398_v0 = vrot.slane %v396_v49, 4  ;;  %v307_v2 = vrot.slane %v306_v51, 4  ;;  %v401_v9 = vrot.slane %v399_v53, 5 }
  0x35   : > { %v2812_v1 = vcombine.low %v384_v42, %v394_v59  ;;  %v407_v10 = vrot.slane %v405_v55, 5  ;;  %v317_v16 = vrot.slane %v316_v60, 4  ;;  %v411_v18 = vrot.slane %v409_v56, 4  ;;  %v739_v55 = vld [vmem:[%s3518_s30 + $0x30] sm:$0xe] }
  0x36   : > { %v415_v20 = vshll.u32 %v3678_v46, 16  ;;  %v2838_v22 = vrot.slane %v735_v50, 9  ;;  %v774_v25 = vrot.slane %v3567_v40, 5  ;;  %v312_v26 = vsel %vm3559_vm4, %v307_v2, %v311_v45 }
  0x37   : > { %3180 = vmatprep.mubr.msk.bf16.mxu1 %vm445_vm3, %v2812_v1  ;;  %v402_v27 = vor.u32 %v401_v9, %v398_v0  ;;  %v764_v31 = vrot.slane %v3524_v5, 5  ;;  %v322_v35 = vsel %vm3559_vm4, %v317_v16, %v321_v34  ;;  %v412_v36 = vor.u32 %v411_v18, %v407_v10  ;;  %v2990_v1 = vld [vmem:[%s4643_s1 + $0xc] sm:$0x3] }
  0x38   : > { %v417_v37 = vrot.slane %v415_v20, 5  ;;  %v2839_v39 = vrot.slane %v736_v12, 9  ;;  %v2809_v42 = vcombine.low %v312_v26, %v322_v35  ;;  %v2822_v45 = vcombine.low %v3521_v4, %v3524_v5  ;;  %v738_v5 = vld [vmem:[%s3518_s30 + $0x24] sm:$0xe]  ;;  %v740_v12 = vld [vmem:[%s3518_s30 + $0x3c] sm:$0xe] }
  0x39   : > { %v403_v43 = vrot.slane %v402_v27, 4  ;;  %v765_v40 = vsel %vm3695_vm7, %v2838_v22, %v764_v31  ;;  %v766_v47 = vrot.slane %v764_v31, 4  ;;  %v413_v15 = vrot.slane %v412_v36, 4 }
  0x3a   : > { %v772_v48 = vsel %vm3695_vm7, %v2839_v39, %v771_v61  ;;  %v773_v49 = vrot.slane %v771_v61, 4  ;;  %3173 = vmatmul.mubr.msk.bf16.gmra.mxu0 %vm445_vm3, %v2809_v42  ;;  %v2840_v53 = vrot.slane %v737_v41, 9  ;;  %v778_v4 = vrot.slane %v3603_v19, 5  ;;  %v741_v41 = vld [vmem:[%s3518_s30 + $0x48] sm:$0xe] }
  0x3b   : > { %v408_v50 = vsel %vm3559_vm4, %v403_v43, %v407_v10  ;;  %v768_v51 = vsel %vm3695_vm7, %v766_v47, %v767_v58  ;;  %v418_v56 = vsel %vm3559_vm4, %v413_v15, %v417_v37  ;;  %v781_v60 = vrot.slane %v3609_v23, 5  ;;  %v3773_v42 = vld [vmem:[%s3518_s30 + $0x54] sm:$0xe]  ;;  %v2898_v43 = vld [vmem:[%s3518_s30 + $0xc] sm:$0xf] }
  0x3c   : > { %v2847_v61 = vcombine.low %v765_v40, %v768_v51  ;;  %v775_v59 = vsel %vm3695_vm7, %v773_v49, %v774_v25  ;;  %v2813_v34 = vcombine.low %v408_v50, %v418_v56  ;;  %v1071_v6 = vsel %vm470_vm0, %v3653_v8, 0  ;;  %v3793_v49 = vld [vmem:[%s4643_s1 + $0xa] sm:$0x3] }
  0x3d   : > { %v779_v58 = vsel %vm3695_vm7, %v2840_v53, %v778_v4  ;;  %v780_v0 = vrot.slane %v778_v4, 4  ;;  %v795_v2 = vrot.slane %v3541_v14, 5  ;;  %v2841_v9 = vrot.slane %v738_v5, 9  ;;  %v2901_v5 = vld [vmem:[%s3518_s30 + $0x18] sm:$0xf] }
  0x3e   : > { %3204 = vmatprep.mubr.msk.bf16.mxu0 %vm445_vm3, %v2847_v61  ;;  %v785_v10 = vrot.slane %v3648_v7, 5  ;;  %v788_v23 = vrot.slane %v3657_v17, 5  ;;  %3181 = vmatmul.mubr.msk.bf16.gmra.mxu1 %vm445_vm3, %v2813_v34  ;;  %v2848_v8 = vcombine.low %v772_v48, %v775_v59  ;;  %v2842_v18 = vrot.slane %v739_v55, 9  ;;  %v3788_v48 = vld [vmem:[%s3518_s30 + $0x14] sm:$0x1] }
  0x3f   : > { %v782_v16 = vsel %vm3695_vm7, %v780_v0, %v781_v60  ;;  %v792_v20 = vrot.slane %v3538_v13, 5  ;;  %3186 = vmatprep.mubr.msk.bf16.mxu1 %vm445_vm3, %v2822_v45  ;;  %v1453_v14 = vsel %vm470_vm0, %v3622_v38, 0  ;;  %v3752_v17 = vsel %vm470_vm0, %v2990_v1, 0  ;;  %v3804_v60 = vld [vmem:[%s3518_s30 + $0x1c] sm:$0xf] }
  0x40   : > { %v2849_v22 = vcombine.low %v779_v58, %v782_v16  ;;  %v787_v25 = vrot.slane %v785_v10, 4  ;;  %v2823_v26 = vcombine.low %v3552_v28, %v3555_v29  ;;  %v2843_v31 = vrot.slane %v740_v12, 9 }
  0x41   : > { %v794_v27 = vrot.slane %v792_v20, 4  ;;  %v799_v35 = vrot.slane %v3582_v57, 5  ;;  %v2824_v36 = vcombine.low %v3596_v3, %v3603_v19  ;;  %v786_v38 = vsel %vm3695_vm7, %v2841_v9, %v785_v10 }
  0x42   : > { %v789_v37 = vsel %vm3695_vm7, %v787_v25, %v788_v23  ;;  %v793_v39 = vsel %vm3695_vm7, %v2842_v18, %v792_v20  ;;  %3205 = vmatmul.mubr.msk.bf16.vlgmr.msra.gmra.mxu0 %vm445_vm3, %v2848_v8  ;;  %v2825_v28 = vcombine.low %v3640_v63, %v3648_v7  ;;  %v802_v19 = vrot.slane %v3590_v62, 5  ;;  %v3785_v62 = vld [vmem:[%s3518_s30 + $0x10] sm:$0xf] }
  0x43   : > { %v796_v29 = vsel %vm3695_vm7, %v794_v27, %v795_v2  ;;  %v801_v3 = vrot.slane %v799_v35, 4  ;;  %3239 = vmatpush3.bf16.msra.mxu0 %v1453_v14  ;;  %3208 = vmatprep.mubr.msk.bf16.mxu0 %vm445_vm3, %v2849_v22  ;;  %v2826_v40 = vcombine.low %v3534_v11, %v3538_v13  ;;  %v2827_v47 = vcombine.low %v3578_v52, %v3582_v57  ;;  %v2904_v2 = vld [vmem:[%s3518_s30 + $0x24] sm:$0xf]  ;;  %v3827_v22 = vld [vmem:[%s3518_s30 + $0x20] sm:$0x1] }
  0x44   : > { %v2828_v15 = vcombine.low %v3616_v32, %v3627_v44  ;;  %v806_v45 = vrot.slane %v3627_v44, 5  ;;  %v2850_v50 = vcombine.low %v786_v38, %v789_v37  ;;  %v2851_v51 = vcombine.low %v793_v39, %v796_v29  ;;  %3337 = vmatprep.subr.msk.bf16.mxu0 %vm470_vm0, %v2990_v1  ;;  %v2910_v13 = vld [vmem:[%s3518_s30 + $0x3c] sm:$0xf]  ;;  %v3900_v57 = vld [vmem:[%s3518_s30 + $0x4c] sm:$0xf] }
  0x45   : > { %v3797_v53 = vsel %vm3695_vm7, %v2843_v31, %v799_v35  ;;  %v2844_v4 = vrot.slane %v741_v41, 9  ;;  %v809_v56 = vrot.slane %v3634_v54, 5  ;;  %v813_v61 = vrot.slane %v3669_v33, 5  ;;  %v3833_v35 = vld [vmem:[%s3518_s30 + $0x28] sm:$0xf] }
  0x46   : > { %v808_v55 = vrot.slane %v806_v45, 4  ;;  %v1211_v59 = vshrl.u32 %v2898_v43, 16  ;;  %3187 = vmatmul.mubr.msk.bf16.vlgmr.msra.gmra.mxu1 %vm445_vm3, %v2823_v26  ;;  %v3809_v34 = vsel %vm3695_vm7, %v801_v3, %v802_v19  ;;  %v2829_v58 = vcombine.low %v3663_v24, %v3669_v33 }
  0x47   : > { %v1214_v0 = vshll.u32 %v2898_v43, 16  ;;  %v1220_v1 = vshll.u32 %v3785_v62, 16  ;;  %3221 = vmatpush3.bf16.msra.mxu1 %v1071_v6  ;;  %3190 = vmatprep.mubr.msk.bf16.mxu1 %vm445_vm3, %v2824_v36  ;;  %v2845_v54 = vrot.slane %v3773_v42, 9  ;;  %v1224_v10 = vshrl.u32 %v3785_v62, 16  ;;  %v3839_v42 = vld [vmem:[%s3518_s30 + $0x2c] sm:$0x1] }
  0x48   : > { %v1213_v9 = vrot.slane %v1211_v59, 4  ;;  %v1230_v23 = vshll.u32 %v3788_v48, 16  ;;  %v807_v12 = vsel %vm3695_vm7, %v2844_v4, %v806_v45  ;;  %v816_v8 = vrot.slane %v3678_v46, 5  ;;  %3336 = vmatprep.subr.msk.bf16.mxu1 %vm470_vm0, %v3793_v49 }
  0x49   : > { %v1216_v16 = vrot.slane %v1214_v0, 5  ;;  %v1222_v18 = vrot.slane %v1220_v1, 5  ;;  %v810_v6 = vsel %vm3695_vm7, %v808_v55, %v809_v56  ;;  %v815_v20 = vrot.slane %v813_v61, 4 }
  0x4a   : > { %v1226_v14 = vrot.slane %v1224_v10, 4  ;;  %v1235_v25 = vshrl.u32 %v2901_v5, 16  ;;  %3209 = vmatmul.mubr.msk.bf16.gmra.mxu0 %vm445_vm3, %v2850_v50  ;;  %v1238_v27 = vshll.u32 %v2901_v5, 16  ;;  %v1244_v46 = vshll.u32 %v3804_v60, 16  ;;  %v2907_v5 = vld [vmem:[%s3518_s30 + $0x30] sm:$0xf] }
  0x4b   : > { %v1217_v26 = vor.u32 %v1216_v16, %v1213_v9  ;;  %v1248_v31 = vshrl.u32 %v3804_v60, 16  ;;  %3212 = vmatprep.mubr.msk.bf16.mxu0 %vm445_vm3, %v2851_v51  ;;  %v1232_v38 = vrot.slane %v1230_v23, 5  ;;  %v1259_v39 = vshrl.u32 %v2904_v2, 16  ;;  %v3872_v9 = vld [vmem:[%s3518_s30 + $0x38] sm:$0x1] }
  0x4c   : > { %v1227_v36 = vor.u32 %v1226_v14, %v1222_v18  ;;  %v1237_v37 = vrot.slane %v1235_v25, 4  ;;  %v1240_v29 = vrot.slane %v1238_v27, 5  ;;  %v3836_v3 = vrot.slane %v1244_v46, 5  ;;  %v3879_v25 = vld [vmem:[%s3518_s30 + $0x40] sm:$0xf] }
  0x4d   : > { %v1218_v41 = vrot.slane %v1217_v26, 4  ;;  %v1250_v19 = vrot.slane %v1248_v31, 4  ;;  %v2852_v43 = vcombine.low %v3797_v53, %v3809_v34  ;;  %v1261_v50 = vrot.slane %v1259_v39, 4  ;;  %v3860_v34 = vld [vmem:[%s3518_s30 + $0x34] sm:$0xf] }
  0x4e   : > { %v1228_v45 = vrot.slane %v1227_v36, 4  ;;  %v1262_v4 = vshll.u32 %v2904_v2, 16  ;;  %3191 = vmatmul.mubr.msk.bf16.gmra.mxu1 %vm445_vm3, %v2825_v28  ;;  %v2853_v51 = vcombine.low %v807_v12, %v810_v6  ;;  %v814_v55 = vsel %vm3695_vm7, %v2845_v54, %v813_v61  ;;  %v3885_v36 = vld [vmem:[%s3518_s30 + $0x44] sm:$0x1] }
  0x4f   : > { %v1254_v56 = vshll.u32 %v3827_v22, 16  ;;  %v1268_v59 = vshll.u32 %v3833_v35, 16  ;;  %3194 = vmatprep.mubr.msk.bf16.mxu1 %vm445_vm3, %v2826_v40  ;;  %v817_v63 = vsel %vm3695_vm7, %v815_v20, %v816_v8  ;;  %v1241_v7 = vor.u32 %v1240_v29, %v1237_v37 }
  0x50   : > { %v1264_v53 = vrot.slane %v1262_v4, 5  ;;  %v1272_v28 = vshrl.u32 %v3833_v35, 16  ;;  %v1223_v61 = vsel %vm3559_vm4, %v1218_v41, %v1222_v18  ;;  %v1233_v0 = vsel %vm3559_vm4, %v1228_v45, %v1232_v38 }
  0x51   : > { %v1251_v1 = vor.u32 %v1250_v19, %v3836_v3  ;;  %v3867_v11 = vrot.slane %v1268_v59, 5  ;;  %v1278_v54 = vshll.u32 %v3839_v42, 16  ;;  %v1283_v10 = vshrl.u32 %v2907_v5, 16 }
  0x52   : > { %v1265_v40 = vor.u32 %v1264_v53, %v1261_v50  ;;  %v1274_v2 = vrot.slane %v1272_v28, 4  ;;  %3213 = vmatmul.mubr.msk.bf16.gmra.mxu0 %vm445_vm3, %v2852_v43  ;;  %v2854_v23 = vcombine.low %v814_v55, %v817_v63  ;;  %v1256_v12 = vrot.slane %v1254_v56, 5  ;;  %v2913_v50 = vld [vmem:[%s3518_s30 + $0x48] sm:$0xf] }
  0x53   : > { %v1286_v8 = vshll.u32 %v2907_v5, 16  ;;  %v1292_v16 = vshll.u32 %v3860_v34, 16  ;;  %3216 = vmatprep.mubr.msk.bf16.mxu0 %vm445_vm3, %v2853_v51  ;;  %v2923_v18 = vcombine.low %v1223_v61, %v1233_v0  ;;  %v1242_v6 = vrot.slane %v1241_v7, 4  ;;  %v3389_v61 = vld [vmem:[%s3518_s30 + $0xc] sm:$0xff]  }
  0x54   : > { %v1275_v20 = vor.u32 %v1274_v2, %v3867_v11  ;;  %v1285_v14 = vrot.slane %v1283_v10, 4  ;;  %v1252_v26 = vrot.slane %v1251_v1, 4  ;;  %v1296_v31 = vshrl.u32 %v3860_v34, 16  ;;  %v2916_v2 = vld [vmem:[%s3518_s30 + $0x54] sm:$0xf] }
  0x55   : > { %v1288_v27 = vrot.slane %v1286_v8, 5  ;;  %v3881_v46 = vrot.slane %v1292_v16, 5  ;;  %v1266_v38 = vrot.slane %v1265_v40, 4  ;;  %v1280_v37 = vrot.slane %v1278_v54, 5 }
  0x56   : > { %v1307_v39 = vshrl.u32 %v2910_v13, 16  ;;  %v1310_v41 = vshll.u32 %v2910_v13, 16  ;;  %3195 = vmatmul.mubr.msk.bf16.gmra.mxu1 %vm445_vm3, %v2827_v47  ;;  %v1276_v29 = vrot.slane %v1275_v20, 4  ;;  %v1298_v19 = vrot.slane %v1296_v31, 4 }
  0x57   : > { %v1302_v43 = vshll.u32 %v3872_v9, 16  ;;  %v1316_v45 = vshll.u32 %v3879_v25, 16  ;;  %3198 = vmatprep.mubr.msk.bf16.mxu1 %vm445_vm3, %v2828_v15  ;;  %v1289_v4 = vor.u32 %v1288_v27, %v1285_v14  ;;  %v1320_v52 = vshrl.u32 %v3879_v25, 16 }
  0x58   : > { %v1309_v5 = vrot.slane %v1307_v39, 4  ;;  %v1312_v51 = vrot.slane %v1310_v41, 5  ;;  %v1247_v47 = vsel %vm3559_vm4, %v1242_v6, %v3836_v3  ;;  %v1257_v55 = vsel %vm3559_vm4, %v1252_v26, %v1256_v12  ;;  %v3924_v12 = vld [vmem:[%s3518_s30 + $0x58] sm:$0xf]  ;;  %v3942_v39 = vld [vmem:[%s3518_s30 + $0x5c] sm:$0x1] }
  0x59   : > { %v1299_v56 = vor.u32 %v1298_v19, %v3881_v46  ;;  %v3908_v32 = vrot.slane %v1316_v45, 5  ;;  %v1322_v15 = vrot.slane %v1320_v52, 4  ;;  %v1326_v59 = vshll.u32 %v3885_v36, 16  ;;  %v3390_v52 = vld [vmem:[%s3518_s30 + $0x18] sm:$0xff]  }
  0x5a   : > { %v1313_v44 = vor.u32 %v1312_v51, %v1309_v5  ;;  %v1331_v63 = vshrl.u32 %v2913_v50, 16  ;;  %3217 = vmatmul.mubr.msk.bf16.gmra.mxu0 %vm445_vm3, %v2854_v23  ;;  %v1271_v3 = vsel %vm3559_vm4, %v1266_v38, %v3867_v11  ;;  %v1281_v7 = vsel %vm3559_vm4, %v1276_v29, %v1280_v37  ;;  %v3959_v51 = vld [vmem:[%s4643_s1 + $0x10] sm:$0x3] }
  0x5b   : > { %v1334_v53 = vshll.u32 %v2913_v50, 16  ;;  %v1340_v28 = vshll.u32 %v3900_v57, 16  ;;  %3240 = vmatprep.mubr.msk.bf16.mxu0 %vm445_vm3, %v2923_v18  ;;  %v1290_v0 = vrot.slane %v1289_v4, 4  ;;  %v1300_v1 = vrot.slane %v1299_v56, 4  ;;  %v3927_v18 = vld [vmem:[%s3518_s30 + $0x50] sm:$0x1] }
  0x5c   : > { %v1304_v13 = vrot.slane %v1302_v43, 5  ;;  %v1323_v40 = vor.u32 %v1322_v15, %v3908_v32  ;;  %v1314_v54 = vrot.slane %v1313_v44, 4  ;;  %v1333_v10 = vrot.slane %v1331_v63, 4  ;;  %v3952_v43 = vld [vmem:[%s3518_s30 + $0x64] sm:$0xf] }
  0x5d   : > { %v1336_v23 = vrot.slane %v1334_v53, 5  ;;  %v1344_v11 = vshrl.u32 %v3900_v57, 16  ;;  %v2924_v8 = vcombine.low %v1247_v47, %v1257_v55  ;;  %v2925_v16 = vcombine.low %v1271_v3, %v1281_v7  ;;  %v3391_v44 = vld [vmem:[%s3518_s30 + $0x24] sm:$0xff]  }
  0x5e   : > { %v1324_v6 = vrot.slane %v1323_v40, 4  ;;  %v1328_v20 = vrot.slane %v1326_v59, 5  ;;  %3199 = vmatmul.mubr.msk.bf16.gmra.mxu1 %vm445_vm3, %v2829_v58  ;;  %v3933_v14 = vrot.slane %v1340_v28, 5  ;;  %v1355_v27 = vshrl.u32 %v2916_v2, 16  ;;  %v2919_v58 = vld [vmem:[%s3518_s30 + $0x60] sm:$0xf] }
  0x5f   : > { %v1346_v26 = vrot.slane %v1344_v11, 4  ;;  %v1358_v31 = vshll.u32 %v2916_v2, 16  ;;  %3222 = vmatprep.mubr.msk.bf16.mxu1 %vm445_vm3, %v3389_v61  ;;  %v1295_v38 = vsel %vm3559_vm4, %v1290_v0, %v3881_v46  ;;  %v1305_v37 = vsel %vm3559_vm4, %v1300_v1, %v1304_v13  ;;  %v3031_v0 = vld [vmem:[%s4643_s1 + $0xe] sm:$0x3]  ;;  %v3980_v11 = vld [vmem:[%s3518_s30 + $0x68] sm:$0x1] }
  0x60   : > { %v1364_v24 = vshll.u32 %v3924_v12, 16  ;;  %v1368_v33 = vshrl.u32 %v3924_v12, 16  ;;  %v1319_v41 = vsel %vm3559_vm4, %v1314_v54, %v3908_v32  ;;  %v1337_v29 = vor.u32 %v1336_v23, %v1333_v10 }
  0x61   : > { %v1350_v19 = vshll.u32 %v3927_v18, 16  ;;  %v1357_v46 = vrot.slane %v1355_v27, 4  ;;  %v1329_v45 = vsel %vm3559_vm4, %v1324_v6, %v1328_v20  ;;  %v1360_v50 = vrot.slane %v1358_v31, 5 }
  0x62   : > { %v1366_v4 = vrot.slane %v1364_v24, 5  ;;  %v1370_v5 = vrot.slane %v1368_v33, 4  ;;  %3241 = vmatmul.mubr.msk.bf16.vlgmr.msra.gmra.mxu0 %vm445_vm3, %v2924_v8  ;;  %v1347_v47 = vor.u32 %v1346_v26, %v3933_v14  ;;  %v1374_v55 = vshll.u32 %v3942_v39, 16  ;;  %v3392_v8 = vld [vmem:[%s3518_s30 + $0x30] sm:$0xff]   ;;  %v3393_v26 = vld [vmem:[%s3518_s30 + $0x3c] sm:$0xff]  }
  0x63   : > { %v1379_v56 = vshrl.u32 %v2919_v58, 16  ;;  %v1382_v32 = vshll.u32 %v2919_v58, 16  ;;  %3275 = vmatpush3.bf16.msra.mxu0 %v3752_v17  ;;  %3244 = vmatprep.mubr.msk.bf16.mxu0 %vm445_vm3, %v2925_v16  ;;  %v1361_v15 = vor.u32 %v1360_v50, %v1357_v46  ;;  %v1388_v63 = vshll.u32 %v3952_v43, 16  ;;  %v2939_v33 = vld [vmem:[%s3518_s30 + $0xc] sm:$0xe] }
  0x64   : > { %v1371_v59 = vor.u32 %v1370_v5, %v1366_v4  ;;  %v1707_v3 = vsel %vm470_vm0, %v3793_v49, 0  ;;  %v1392_v7 = vshrl.u32 %v3952_v43, 16  ;;  %3339 = vmatprep.subr.msk.bf16.mxu0 %vm470_vm0, %v3959_v51  ;;  %v2926_v53 = vcombine.low %v1295_v38, %v1305_v37  ;;  %v2940_v46 = vld [vmem:[%s3518_s30 + $0x18] sm:$0xe]  ;;  %v3394_v5 = vld [vmem:[%s3518_s30 + $0x48] sm:$0xff]  }
  0x65   : > { %v2927_v28 = vcombine.low %v1319_v41, %v1329_v45  ;;  %v1338_v61 = vrot.slane %v1337_v29, 4  ;;  %v1352_v17 = vrot.slane %v1350_v19, 5  ;;  %v1348_v1 = vrot.slane %v1347_v47, 4 }
  0x66   : > { %3223 = vmatmul.mubr.msk.bf16.vlgmr.msra.gmra.mxu1 %vm445_vm3, %v3390_v52  ;;  %v1376_v13 = vrot.slane %v1374_v55, 5  ;;  %v1381_v49 = vrot.slane %v1379_v56, 4  ;;  %v1384_v40 = vrot.slane %v1382_v32, 5  ;;  %v1362_v2 = vrot.slane %v1361_v15, 4  ;;  %v3395_v56 = vld [vmem:[%s3518_s30 + $0x54] sm:$0xff]  }
  0x67   : > { %3257 = vmatpush3.bf16.msra.mxu1 %v1707_v3  ;;  %3226 = vmatprep.mubr.msk.bf16.mxu1 %vm445_vm3, %v3391_v44  ;;  %v1372_v54 = vrot.slane %v1371_v59, 4  ;;  %v1390_v10 = vrot.slane %v1388_v63, 5  ;;  %v1394_v23 = vrot.slane %v1392_v7, 4  ;;  %v1343_v16 = vsel %vm3559_vm4, %v1338_v61, %v3933_v14  ;;  %v2942_v63 = vld [vmem:[%s3518_s30 + $0x30] sm:$0xe] }
  0x68   : > { %3338 = vmatprep.subr.msk.bf16.mxu1 %vm470_vm0, %v3031_v0  ;;  %v1353_v6 = vsel %vm3559_vm4, %v1348_v1, %v1352_v17  ;;  %v1385_v20 = vor.u32 %v1384_v40, %v1381_v49  ;;  %v1367_v27 = vsel %vm3559_vm4, %v1362_v2, %v1366_v4  ;;  %v1398_v37 = vshll.u32 %v3980_v11, 16  ;;  %v2941_v4 = vld [vmem:[%s3518_s30 + $0x24] sm:$0xe]  ;;  %v2943_v7 = vld [vmem:[%s3518_s30 + $0x3c] sm:$0xe] }
  0x69   : > { %v1377_v31 = vsel %vm3559_vm4, %v1372_v54, %v1376_v13  ;;  %v1395_v38 = vor.u32 %v1394_v23, %v1390_v10  ;;  %v2928_v14 = vcombine.low %v1343_v16, %v1353_v6  ;;  %v1602_v58 = vrot.slane %v3785_v62, 5  ;;  %v2944_v13 = vld [vmem:[%s3518_s30 + $0x48] sm:$0xe]  ;;  %v3007_v49 = vld [vmem:[%s3518_s30 + $0x18] sm:$0xf]  ;;  %v3396_v6 = vld [vmem:[%s3518_s30 + $0x60] sm:$0xff]  }
  0x6a   : > { %3245 = vmatmul.mubr.msk.bf16.gmra.mxu0 %vm445_vm3, %v2926_v53  ;;  %v2929_v24 = vcombine.low %v1367_v27, %v1377_v31  ;;  %v1386_v41 = vrot.slane %v1385_v20, 4  ;;  %v1400_v19 = vrot.slane %v1398_v37, 5  ;;  %v1609_v45 = vrot.slane %v3804_v60, 5 }
  0x6b   : > { %3248 = vmatprep.mubr.msk.bf16.mxu0 %vm445_vm3, %v2927_v28  ;;  %v1396_v29 = vrot.slane %v1395_v38, 4  ;;  %v1616_v50 = vrot.slane %v3833_v35, 5  ;;  %v2947_v52 = vrot.slane %v2939_v33, 9  ;;  %v1604_v47 = vrot.slane %v1602_v58, 4 }
  0x6c   : > { %v1605_v62 = vrot.slane %v3788_v48, 5  ;;  %v2948_v55 = vrot.slane %v2940_v46, 9  ;;  %v1391_v32 = vsel %vm3559_vm4, %v1386_v41, %v1390_v10  ;;  %v1611_v35 = vrot.slane %v1609_v45, 4  ;;  %v4050_v10 = vld [vmem:[%s3518_s30 + $0x1c] sm:$0xf] }
  0x6d   : > { %v1401_v60 = vsel %vm3559_vm4, %v1396_v29, %v1400_v19  ;;  %v1612_v44 = vrot.slane %v3827_v22, 5  ;;  %v2949_v15 = vrot.slane %v2941_v4, 9  ;;  %v1618_v59 = vrot.slane %v1616_v50, 4  ;;  %v3010_v29 = vld [vmem:[%s3518_s30 + $0x24] sm:$0xf]  ;;  %v3399_v4 = vld [vmem:[%s3518_s30 + $0x30] sm:$0xff]  }
  0x6e   : > { %3227 = vmatmul.mubr.msk.bf16.gmra.mxu1 %vm445_vm3, %v3392_v8  ;;  %v1619_v48 = vrot.slane %v3839_v42, 5  ;;  %v1623_v3 = vrot.slane %v3860_v34, 5  ;;  %v2930_v53 = vcombine.low %v1391_v32, %v1401_v60  ;;  %v1603_v28 = vsel %vm3695_vm7, %v2947_v52, %v1602_v58  ;;  %v3397_v42 = vld [vmem:[%s3518_s30 + $0x18] sm:$0xff]  }
  0x6f   : > { %3230 = vmatprep.mubr.msk.bf16.mxu1 %vm445_vm3, %v3393_v26  ;;  %v1606_v22 = vsel %vm3695_vm7, %v1604_v47, %v1605_v62  ;;  %v4025_v61 = vsel %vm470_vm0, %v3031_v0, 0  ;;  %v4031_v34 = vsel %vm3695_vm7, %v2948_v55, %v1609_v45  ;;  %v4035_v17 = vsel %vm3695_vm7, %v1611_v35, %v1612_v44  ;;  %v4094_v55 = vld [vmem:[%s3518_s30 + $0x28] sm:$0xf] }
  0x70   : > { %v2545_v1 = vsel %vm470_vm0, %v3959_v51, 0  ;;  %v4043_v0 = vsel %vm3695_vm7, %v2949_v15, %v1616_v50  ;;  %v4047_v40 = vsel %vm3695_vm7, %v1618_v59, %v1619_v48  ;;  %v2950_v2 = vrot.slane %v2942_v63, 9  ;;  %v3009_v15 = vld [vmem:[%s3518_s30 + $0x20] sm:$0x1] }
  0x71   : > { %v2951_v54 = vrot.slane %v2943_v7, 9  ;;  %v2956_v23 = vcombine.low %v1603_v28, %v1606_v22  ;;  %v1625_v8 = vrot.slane %v1623_v3, 4  ;;  %v1626_v16 = vrot.slane %v3872_v9, 5 }
  0x72   : > { %3249 = vmatmul.mubr.msk.bf16.gmra.mxu0 %vm445_vm3, %v2928_v14  ;;  %v1630_v51 = vrot.slane %v3879_v25, 5  ;;  %v2957_v20 = vcombine.low %v4031_v34, %v4035_v17  ;;  %v2952_v26 = vrot.slane %v2944_v13, 9  ;;  %v2049_v27 = vshrl.u32 %v3007_v49, 16  ;;  %v2945_v25 = vld [vmem:[%s3518_s30 + $0x54] sm:$0xe] }
  0x73   : > { %3252 = vmatprep.mubr.msk.bf16.mxu0 %vm445_vm3, %v2929_v24  ;;  %v2052_v31 = vshll.u32 %v3007_v49, 16  ;;  %v2958_v38 = vcombine.low %v4043_v0, %v4047_v40  ;;  %v1633_v9 = vrot.slane %v3885_v36, 5  ;;  %v2058_v37 = vshll.u32 %v4050_v10, 16  ;;  %v3398_v36 = vld [vmem:[%s3518_s30 + $0x24] sm:$0xff]  }
  0x74   : > { %v2062_v14 = vshrl.u32 %v4050_v10, 16  ;;  %v4067_v24 = vsel %vm3695_vm7, %v2950_v2, %v1623_v3  ;;  %v4071_v33 = vsel %vm3695_vm7, %v2951_v54, %v1630_v51  ;;  %v1637_v58 = vrot.slane %v3900_v57, 5  ;;  %v3049_v17 = vld [vmem:[%s3518_s30 + $0x24] sm:$0xe] }
  0x75   : > { %v1644_v41 = vrot.slane %v3924_v12, 5  ;;  %v4079_v19 = vsel %vm3695_vm7, %v1625_v8, %v1626_v16  ;;  %v1632_v46 = vrot.slane %v1630_v51, 4  ;;  %v1640_v45 = vrot.slane %v3927_v18, 5 }
  0x76   : > { %3231 = vmatmul.mubr.msk.bf16.gmra.mxu1 %vm445_vm3, %v3394_v5  ;;  %v1651_v50 = vrot.slane %v3952_v43, 5  ;;  %v4087_v57 = vsel %vm3695_vm7, %v2952_v26, %v1637_v58  ;;  %v2953_v12 = vrot.slane %v2945_v25, 9  ;;  %v2946_v5 = vld [vmem:[%s3518_s30 + $0x60] sm:$0xe]  ;;  %v2051_v52 = vrot.slane %v2049_v27, 4 }
  0x77   : > { %3234 = vmatprep.mubr.msk.bf16.mxu1 %vm445_vm3, %v3395_v56  ;;  %v2054_v47 = vrot.slane %v2052_v31, 5  ;;  %v4091_v62 = vrot.slane %v2058_v37, 5  ;;  %v2064_v18 = vrot.slane %v2062_v14, 4  ;;  %v2073_v43 = vshrl.u32 %v3010_v29, 16  ;;  %v3013_v26 = vld [vmem:[%s3518_s30 + $0x30] sm:$0xf] }
  0x78   : > { %v2076_v56 = vshll.u32 %v3010_v29, 16  ;;  %v2959_v32 = vcombine.low %v4067_v24, %v4079_v19  ;;  %v1639_v60 = vrot.slane %v1637_v58, 4  ;;  %v1646_v35 = vrot.slane %v1644_v41, 4  ;;  %v4139_v27 = vld [vmem:[%s3518_s30 + $0x34] sm:$0xf]  ;;  %v3400_v31 = vld [vmem:[%s3518_s30 + $0x3c] sm:$0xff]  }
  0x79   : > { %v1647_v44 = vrot.slane %v3942_v39, 5  ;;  %v4102_v59 = vsel %vm3695_vm7, %v1632_v46, %v1633_v9  ;;  %v2954_v48 = vrot.slane %v2946_v5, 9  ;;  %v1653_v63 = vrot.slane %v1651_v50, 4 }
  0x7a   : > { %3253 = vmatmul.mubr.msk.bf16.gmra.mxu0 %vm445_vm3, %v2930_v53  ;;  %v1654_v3 = vrot.slane %v3980_v11, 5  ;;  %v2055_v7 = vor.u32 %v2054_v47, %v2051_v52  ;;  %v3048_v53 = vld [vmem:[%s3518_s30 + $0x18] sm:$0xe]  ;;  %v2440_v28 = vrot.slane %v4050_v10, 5  ;;  %v2082_v22 = vshll.u32 %v4094_v55, 16 }
  0x7b   : > { %3276 = vmatprep.mubr.msk.bf16.mxu0 %vm445_vm3, %v3397_v42  ;;  %v2086_v39 = vshrl.u32 %v4094_v55, 16  ;;  %v2065_v42 = vor.u32 %v2064_v18, %v4091_v62  ;;  %v2068_v11 = vshll.u32 %v3009_v15, 16  ;;  %v2075_v13 = vrot.slane %v2073_v43, 4  ;;  %v3016_v52 = vld [vmem:[%s3518_s30 + $0x3c] sm:$0xf] }
  0x7c   : > { %v2078_v49 = vrot.slane %v2076_v56, 5  ;;  %v2960_v2 = vcombine.low %v4071_v33, %v4102_v59  ;;  %v4116_v54 = vsel %vm3695_vm7, %v1639_v60, %v1640_v45  ;;  %v4120_v10 = vsel %vm3695_vm7, %v2953_v12, %v1644_v41  ;;  %v3401_v33 = vld [vmem:[%s3518_s30 + $0x48] sm:$0xff]   ;;  %v3015_v60 = vld [vmem:[%s3518_s30 + $0x38] sm:$0x1] }
  0x7d   : > { %v4131_v8 = vsel %vm3695_vm7, %v2954_v48, %v1651_v50  ;;  %v4135_v16 = vsel %vm3695_vm7, %v1653_v63, %v1654_v3  ;;  %v3056_v51 = vrot.slane %v3048_v53, 9  ;;  %v2056_v9 = vrot.slane %v2055_v7, 4  ;;  %v3050_v48 = vld [vmem:[%s3518_s30 + $0x30] sm:$0xe]  ;;  %v3402_v53 = vld [vmem:[%s3518_s30 + $0x54] sm:$0xff]  }
  0x7e   : > { %3235 = vmatmul.mubr.msk.bf16.gmra.mxu1 %vm445_vm3, %v3396_v6  ;;  %v2443_v6 = vrot.slane %v3009_v15, 5  ;;  %v2442_v25 = vrot.slane %v2440_v28, 4  ;;  %v4146_v37 = vrot.slane %v2082_v22, 5  ;;  %v2088_v14 = vrot.slane %v2086_v39, 4 }
  0x7f   : > { %3258 = vmatprep.mubr.msk.bf16.mxu1 %vm445_vm3, %v2956_v23  ;;  %v4127_v23 = vld [vmem:[%s3518_s30 + $0x2c] sm:$0x1]  ;;  %v2066_v58 = vrot.slane %v2065_v42, 4  ;;  %v2070_v41 = vrot.slane %v2068_v11, 5  ;;  %v2079_v29 = vor.u32 %v2078_v49, %v2075_v13  ;;  %v2106_v46 = vshll.u32 %v4139_v27, 16  ;;  %v3403_v11 = vld [vmem:[%s3518_s30 + $0x60] sm:$0xff]  }
  0x80   : > { %v2092_v34 = vshll.u32 %v4127_v23, 16  ;;  %v2110_v45 = vshrl.u32 %v4139_v27, 16  ;;  %v2963_v40 = vcombine.low %v4131_v8, %v4135_v16  ;;  %v2061_v50 = vsel %vm3559_vm4, %v2056_v9, %v4091_v62  ;;  %v4183_v62 = vld [vmem:[%s3518_s30 + $0x40] sm:$0xf] }
  0x81   : > { %v2089_v12 = vor.u32 %v2088_v14, %v4146_v37  ;;  %v2447_v5 = vrot.slane %v4094_v55, 5  ;;  %v2071_v47 = vsel %vm3559_vm4, %v2066_v58, %v2070_v41  ;;  %v2080_v18 = vrot.slane %v2079_v29, 4  ;;  %v3051_v29 = vld [vmem:[%s3518_s30 + $0x3c] sm:$0xe] }
  0x82   : > { %3277 = vmatmul.mubr.msk.bf16.vlgmr.msra.gmra.mxu0 %vm445_vm3, %v3398_v36  ;;  %v2100_v36 = vshll.u32 %v3013_v26, 16  ;;  %v2094_v43 = vrot.slane %v2092_v34, 5  ;;  %v3057_v56 = vrot.slane %v3049_v17, 9  ;;  %v4186_v15 = vrot.slane %v2106_v46, 5 }
  0x83   : > { %3311 = vmatpush3.bf16.msra.mxu0 %v2545_v1  ;;  %3280 = vmatprep.mubr.msk.bf16.mxu0 %vm445_vm3, %v3399_v4  ;;  %v4124_v1 = vsel %vm3695_vm7, %v1646_v35, %v1647_v44  ;;  %v4174_v4 = vsel %vm3695_vm7, %v2442_v25, %v2443_v6  ;;  %v2112_v59 = vrot.slane %v2110_v45, 4  ;;  %v2450_v55 = vrot.slane %v4127_v23, 5  ;;  %v3019_v6 = vld [vmem:[%s3518_s30 + $0x48] sm:$0xf] }
  0x84   : > { %v2962_v0 = vcombine.low %v4120_v10, %v4124_v1  ;;  %v2102_v44 = vrot.slane %v2100_v36, 5  ;;  %v2454_v63 = vrot.slane %v4139_v27, 5  ;;  %v2121_v3 = vshrl.u32 %v3016_v52, 16 }
  0x85   : > { %v2124_v7 = vshll.u32 %v3016_v52, 16  ;;  %v2449_v22 = vrot.slane %v2447_v5, 4  ;;  %v2130_v39 = vshll.u32 %v4183_v62, 16  ;;  %v2134_v42 = vshrl.u32 %v4183_v62, 16 }
  0x86   : > { %3259 = vmatmul.mubr.msk.bf16.vlgmr.msra.gmra.mxu1 %vm445_vm3, %v2957_v20  ;;  %v2097_v20 = vshrl.u32 %v3013_v26, 16  ;;  %v4200_v13 = vcombine.low %v2061_v50, %v2071_v47  ;;  %v2085_v24 = vsel %vm3559_vm4, %v2080_v18, %v4146_v37  ;;  %v4209_v19 = vsel %vm3695_vm7, %v3057_v56, %v2447_v5  ;;  %v4214_v26 = vld [vmem:[%s3518_s30 + $0x4c] sm:$0xf] }
  0x87   : > { %3293 = vmatpush3.bf16.msra.mxu1 %v4025_v61  ;;  %3262 = vmatprep.mubr.msk.bf16.mxu1 %vm445_vm3, %v2958_v38  ;;  %v2961_v61 = vcombine.low %v4087_v57, %v4116_v54  ;;  %v4166_v38 = vsel %vm3695_vm7, %v3056_v51, %v2440_v28  ;;  %v2090_v28 = vrot.slane %v2089_v12, 4  ;;  %v2113_v23 = vor.u32 %v2112_v59, %v4186_v15  ;;  %v3404_v47 = vld [vmem:[%s3518_s30 + $0x6c] sm:$0xff]  }
  0x88   : > { %v2099_v35 = vrot.slane %v2097_v20, 4  ;;  %v3065_v49 = vcombine.low %v4166_v38, %v4174_v4  ;;  %v3058_v51 = vrot.slane %v3050_v48, 9  ;;  %v2456_v27 = vrot.slane %v2454_v63, 4 }
  0x89   : > { %v2123_v9 = vrot.slane %v2121_v3, 4  ;;  %v2126_v25 = vrot.slane %v2124_v7, 5  ;;  %v2095_v37 = vsel %vm3559_vm4, %v2090_v28, %v2094_v43  ;;  %v4221_v14 = vsel %vm3695_vm7, %v2449_v22, %v2450_v55  ;;  %v3022_v55 = vld [vmem:[%s3518_s30 + $0x54] sm:$0xf] }
  0x8a   : > { %3281 = vmatmul.mubr.msk.bf16.gmra.mxu0 %vm445_vm3, %v3400_v31  ;;  %v2457_v31 = vrot.slane %v3015_v60, 5  ;;  %v4224_v58 = vrot.slane %v2130_v39, 5  ;;  %v2136_v41 = vrot.slane %v2134_v42, 4  ;;  %v2145_v34 = vshrl.u32 %v3019_v6, 16  ;;  %v3025_v42 = vld [vmem:[%s3518_s30 + $0x60] sm:$0xf] }
  0x8b   : > { %3284 = vmatprep.mubr.msk.bf16.mxu0 %vm445_vm3, %v3401_v33  ;;  %v3018_v33 = vld [vmem:[%s3518_s30 + $0x44] sm:$0x1]  ;;  %v2148_v17 = vshll.u32 %v3019_v6, 16  ;;  %v2154_v20 = vshll.u32 %v4214_v26, 16  ;;  %v2158_v36 = vshrl.u32 %v4214_v26, 16  ;;  %v4232_v45 = vrot.slane %v2113_v23, 4 }
  0x8c   : > { %v4238_v50 = vsel %vm3695_vm7, %v3058_v51, %v2454_v63  ;;  %v4242_v4 = vsel %vm3695_vm7, %v2456_v27, %v2457_v31  ;;  %v2127_v12 = vor.u32 %v2126_v25, %v2123_v9  ;;  %v2140_v5 = vshll.u32 %v3018_v33, 16  ;;  %v4287_v23 = vld [vmem:[%s3518_s30 + $0x64] sm:$0xf] }
  0x8d   : > { %v2461_v52 = vrot.slane %v4183_v62, 5  ;;  %v4250_v18 = vcombine.low %v2085_v24, %v2095_v37  ;;  %v3066_v43 = vcombine.low %v4209_v19, %v4221_v14  ;;  %v2137_v56 = vor.u32 %v2136_v41, %v4224_v58 }
  0x8e   : > { %3263 = vmatmul.mubr.msk.bf16.gmra.mxu1 %vm445_vm3, %v2959_v32  ;;  %v2103_v32 = vor.u32 %v2102_v44, %v2099_v35  ;;  %v3021_v35 = vld [vmem:[%s3518_s30 + $0x50] sm:$0x1]  ;;  %v2147_v57 = vrot.slane %v2145_v34, 4  ;;  %v2150_v54 = vrot.slane %v2148_v17, 5  ;;  %v2160_v62 = vrot.slane %v2158_v36, 4 }
  0x8f   : > { %3266 = vmatprep.mubr.msk.bf16.mxu1 %vm445_vm3, %v2960_v2  ;;  %v2116_v2 = vshll.u32 %v3015_v60, 16  ;;  %v3059_v60 = vrot.slane %v3051_v29, 9  ;;  %v3052_v44 = vld [vmem:[%s3518_s30 + $0x48] sm:$0xe]  ;;  %v3067_v1 = vcombine.low %v4238_v50, %v4242_v4  ;;  %v2128_v48 = vrot.slane %v2127_v12, 4 }
  0x90   : > { %v4230_v46 = vrot.slane %v2103_v32, 4  ;;  %v2142_v63 = vrot.slane %v2140_v5, 5  ;;  %v2463_v3 = vrot.slane %v2461_v52, 4  ;;  %v2464_v7 = vrot.slane %v3018_v33, 5  ;;  %v3024_v29 = vld [vmem:[%s3518_s30 + $0x5c] sm:$0x1] }
  0x91   : > { %v4234_v38 = vrot.slane %v2116_v2, 5  ;;  %v4281_v28 = vsel %vm3695_vm7, %v3059_v60, %v2461_v52  ;;  %v2164_v22 = vshll.u32 %v3021_v35, 16  ;;  %v3060_v39 = vrot.slane %v3052_v44, 9  ;;  %v3027_v12 = vld [vmem:[%s3518_s30 + $0x68] sm:$0x1] }
  0x92   : > { %3285 = vmatmul.mubr.msk.bf16.gmra.mxu0 %vm445_vm3, %v3402_v53  ;;  %v2109_v59 = vsel %vm3559_vm4, %v4230_v46, %v4186_v15  ;;  %v4276_v53 = vld [vmem:[%s3518_s30 + $0x58] sm:$0xf]  ;;  %v2138_v15 = vrot.slane %v2137_v56, 4  ;;  %v2471_v19 = vrot.slane %v3021_v35, 5  ;;  %v2169_v32 = vshrl.u32 %v3022_v55, 16 }
  0x93   : > { %3288 = vmatprep.mubr.msk.bf16.mxu0 %vm445_vm3, %v3403_v11  ;;  %v2119_v10 = vsel %vm3559_vm4, %v4232_v45, %v4234_v38  ;;  %v2151_v11 = vor.u32 %v2150_v54, %v2147_v57  ;;  %v2172_v51 = vshll.u32 %v3022_v55, 16  ;;  %v2178_v6 = vshll.u32 %v4276_v53, 16  ;;  %v3053_v46 = vld [vmem:[%s3518_s30 + $0x54] sm:$0xe]  ;;  %v3028_v57 = vld [vmem:[%s3518_s30 + $0x6c] sm:$0xf] }
  0x94   : > { %v2133_v27 = vsel %vm3559_vm4, %v2128_v48, %v4224_v58  ;;  %v2193_v31 = vshrl.u32 %v3025_v42, 16  ;;  %v2196_v9 = vshll.u32 %v3025_v42, 16  ;;  %v2143_v25 = vsel %vm3559_vm4, %v2138_v15, %v2142_v63 }
  0x95   : > { %v2166_v37 = vrot.slane %v2164_v22, 5  ;;  %v2202_v14 = vshll.u32 %v4287_v23, 16  ;;  %v2206_v33 = vshrl.u32 %v4287_v23, 16  ;;  %v2152_v58 = vrot.slane %v2151_v11, 4 }
  0x96   : > { %3267 = vmatmul.mubr.msk.bf16.gmra.mxu1 %vm445_vm3, %v2961_v61  ;;  %v4260_v61 = vrot.slane %v2154_v20, 5  ;;  %v2171_v16 = vrot.slane %v2169_v32, 4  ;;  %v2174_v34 = vrot.slane %v2172_v51, 5  ;;  %v4313_v17 = vrot.slane %v2178_v6, 5  ;;  %v3030_v6 = vld [vmem:[%s3518_s30 + $0x74] sm:$0x1] }
  0x97   : > { %3270 = vmatprep.mubr.msk.bf16.mxu1 %vm445_vm3, %v2962_v0  ;;  %v2468_v0 = vrot.slane %v4214_v26, 5  ;;  %v2182_v26 = vshrl.u32 %v4276_v53, 16  ;;  %v3034_v36 = vcombine.low %v2109_v59, %v2119_v10  ;;  %v2195_v45 = vrot.slane %v2193_v31, 4  ;;  %v3029_v10 = vld [vmem:[%s3518_s30 + $0x70] sm:$0xf] }
  0x98   : > { %v2161_v24 = vor.u32 %v2160_v62, %v4260_v61  ;;  %v2198_v38 = vrot.slane %v2196_v9, 5  ;;  %v3035_v50 = vcombine.low %v2133_v27, %v2143_v25  ;;  %v4321_v5 = vrot.slane %v2202_v14, 5  ;;  %v3055_v25 = vld [vmem:[%s3518_s30 + $0x6c] sm:$0xe] }
  0x99   : > { %v2470_v2 = vrot.slane %v2468_v0, 4  ;;  %v2469_v8 = vsel %vm3695_vm7, %v3060_v39, %v2468_v0  ;;  %v2184_v20 = vrot.slane %v2182_v26, 4  ;;  %v2208_v52 = vrot.slane %v2206_v33, 4 }
  0x9a   : > { %3289 = vmatmul.mubr.msk.bf16.gmra.mxu0 %vm445_vm3, %v3404_v47  ;;  %v2162_v41 = vrot.slane %v2161_v24, 4  ;;  %v2157_v47 = vsel %vm3559_vm4, %v2152_v58, %v4260_v61  ;;  %v2482_v35 = vrot.slane %v4287_v23, 5  ;;  %v2175_v54 = vor.u32 %v2174_v34, %v2171_v16 }
  0x9b   : > { %3312 = vmatprep.mubr.msk.bf16.mxu0 %vm445_vm3, %v3065_v49  ;;  %v4296_v49 = vsel %vm3695_vm7, %v2463_v3, %v2464_v7  ;;  %v2185_v62 = vor.u32 %v2184_v20, %v4313_v17  ;;  %v2188_v44 = vshll.u32 %v3024_v29, 16  ;;  %v3061_v59 = vrot.slane %v3053_v46, 9 }
  0x9c   : > { %v3068_v4 = vcombine.low %v4281_v28, %v4296_v49  ;;  %v2167_v56 = vsel %vm3559_vm4, %v2162_v41, %v2166_v37  ;;  %v2199_v55 = vor.u32 %v2198_v38, %v2195_v45  ;;  %v2212_v48 = vshll.u32 %v3027_v12, 16 }
  0x9d   : > { %v2209_v61 = vor.u32 %v2208_v52, %v4321_v5  ;;  %v2217_v3 = vshrl.u32 %v3028_v57, 16  ;;  %v2220_v7 = vshll.u32 %v3028_v57, 16  ;;  %v2485_v15 = vrot.slane %v3027_v12, 5 }
  0x9e   : > { %3271 = vmatmul.mubr.msk.bf16.gmra.mxu1 %vm445_vm3, %v2963_v40  ;;  %v2472_v40 = vsel %vm3695_vm7, %v2470_v2, %v2471_v19  ;;  %v2226_v28 = vshll.u32 %v3029_v10, 16  ;;  %v2230_v22 = vshrl.u32 %v3029_v10, 16  ;;  %v3036_v39 = vcombine.low %v2157_v47, %v2167_v56 }
  0x9f   : > { %3294 = vmatprep.mubr.msk.bf16.mxu1 %vm445_vm3, %v4200_v13  ;;  %v2475_v13 = vrot.slane %v4276_v53, 5  ;;  %v3069_v60 = vcombine.low %v2469_v8, %v2472_v40  ;;  %v2484_v53 = vrot.slane %v2482_v35, 4  ;;  %v2176_v42 = vrot.slane %v2175_v54, 4 }
  0xa0   : > { %v2186_v11 = vrot.slane %v2185_v62, 4  ;;  %v2190_v24 = vrot.slane %v2188_v44, 5  ;;  %v2200_v32 = vrot.slane %v2199_v55, 4  ;;  %v2214_v23 = vrot.slane %v2212_v48, 5 }
  0xa1   : > { %v2477_v0 = vrot.slane %v2475_v13, 4  ;;  %v2210_v2 = vrot.slane %v2209_v61, 4  ;;  %v2219_v26 = vrot.slane %v2217_v3, 4  ;;  %v2222_v27 = vrot.slane %v2220_v7, 5 }
  0xa2   : > { %3313 = vmatmul.mubr.msk.bf16.vlgmr.msra.gmra.mxu0 %vm445_vm3, %v3066_v43  ;;  %v3054_v43 = vld [vmem:[%s3518_s30 + $0x60] sm:$0xe]  ;;  %v2486_v49 = vsel %vm3695_vm7, %v2484_v53, %v2485_v15  ;;  %v2228_v31 = vrot.slane %v2226_v28, 5  ;;  %v2232_v9 = vrot.slane %v2230_v22, 4  ;;  %v2489_v37 = vrot.slane %v3029_v10, 5 }
  0xa3   : > { %3316 = vmatprep.mubr.msk.bf16.mxu0 %vm445_vm3, %v3067_v1  ;;  %v2478_v1 = vrot.slane %v3024_v29, 5  ;;  %v3062_v63 = vrot.slane %v3054_v43, 9  ;;  %v2181_v14 = vsel %vm3559_vm4, %v2176_v42, %v4313_v17  ;;  %v2191_v33 = vsel %vm3559_vm4, %v2186_v11, %v2190_v24 }
  0xa4   : > { %v2205_v41 = vsel %vm3559_vm4, %v2200_v32, %v4321_v5  ;;  %v2215_v8 = vsel %vm3559_vm4, %v2210_v2, %v2214_v23  ;;  %v2236_v40 = vshll.u32 %v3030_v6, 16  ;;  %v3063_v29 = vrot.slane %v3055_v25, 9 }
  0xa5   : > { %v2479_v19 = vsel %vm3695_vm7, %v2477_v0, %v2478_v1  ;;  %v2483_v51 = vsel %vm3695_vm7, %v3062_v63, %v2482_v35  ;;  %v2223_v34 = vor.u32 %v2222_v27, %v2219_v26  ;;  %v2233_v17 = vor.u32 %v2232_v9, %v2228_v31 }
  0xa6   : > { %3295 = vmatmul.mubr.msk.bf16.vlgmr.msra.gmra.mxu1 %vm445_vm3, %v4250_v18  ;;  %v2476_v18 = vsel %vm3695_vm7, %v3061_v59, %v2475_v13  ;;  %v3071_v16 = vcombine.low %v2483_v51, %v2486_v49  ;;  %v2491_v20 = vrot.slane %v2489_v37, 4  ;;  %v3037_v46 = vcombine.low %v2181_v14, %v2191_v33 }
  0xa7   : > { %3298 = vmatprep.mubr.msk.bf16.mxu1 %vm445_vm3, %v3034_v36  ;;  %v3070_v58 = vcombine.low %v2476_v18, %v2479_v19  ;;  %v2492_v36 = vrot.slane %v3030_v6, 5  ;;  %v3038_v13 = vcombine.low %v2205_v41, %v2215_v8  ;;  %v2238_v45 = vrot.slane %v2236_v40, 5 }
  0xa8   : > { %v2224_v38 = vrot.slane %v2223_v34, 4 }
  0xa9   : > { %v2493_v12 = vsel %vm3695_vm7, %v2491_v20, %v2492_v36 }
  0xaa   : > { %3317 = vmatmul.mubr.msk.bf16.gmra.mxu0 %vm445_vm3, %v3068_v4  ;;  %v2490_v4 = vsel %vm3695_vm7, %v3063_v29, %v2489_v37  ;;  %v2229_v52 = vsel %vm3559_vm4, %v2224_v38, %v2228_v31 }
  0xab   : > { %3320 = vmatprep.mubr.msk.bf16.mxu0 %vm445_vm3, %v3069_v60  ;;  %v3072_v5 = vcombine.low %v2490_v4, %v2493_v12 }
  0xae   : > { %3299 = vmatmul.mubr.msk.bf16.gmra.mxu1 %vm445_vm3, %v3035_v50  ;;  %v2234_v50 = vrot.slane %v2233_v17, 4 }
  0xaf   : > { %3302 = vmatprep.mubr.msk.bf16.mxu1 %vm445_vm3, %v3036_v39 }
  0xb0   : > { %v2239_v47 = vsel %vm3559_vm4, %v2234_v50, %v2238_v45 }
  0xb1   : > { %v3039_v56 = vcombine.low %v2229_v52, %v2239_v47 }
  0xb2   : > { %3321 = vmatmul.mubr.msk.bf16.gmra.mxu0 %vm445_vm3, %v3070_v58 }
  0xb3   : > { %3324 = vmatprep.mubr.msk.bf16.mxu0 %vm445_vm3, %v3071_v16 }
  0xb6   : > { %3303 = vmatmul.mubr.msk.bf16.gmra.mxu1 %vm445_vm3, %v3037_v46 }
  0xb7   : > { %3306 = vmatprep.mubr.msk.bf16.mxu1 %vm445_vm3, %v3038_v13 }
  0xba   : > { %3325 = vmatmul.mubr.msk.bf16.gmra.mxu0 %vm445_vm3, %v3072_v5 }
  0xbe   : > { %3307 = vmatmul.mubr.msk.bf16.gmra.mxu1 %vm445_vm3, %v3039_v56 }
  0xe9   : > { %v3170_v60 = vpop.f32.mrf.mxu0 }
  0xeb   : > { %v508_v21 = vpop.f32.mrf.mxu0 }
  0xed   : > { %v3171_v57 = vpop.f32.mrf.mxu0 }
  0xee   : > { %v3178_v43 = vpop.f32.mrf.mxu1 }
  0xef   : > { %v511_v62 = vpop.f32.mrf.mxu0 }
  0xf0   : > { %v540_v35 = vpop.f32.mrf.mxu1 }
  0xf2   : > { %v3179_v54 = vpop.f32.mrf.mxu1 }
  0xf4   : > { %v543_v44 = vpop.f32.mrf.mxu1 }
  0xfa   : > { %v3174_v59 = vpop.f32.mrf.mxu0 }
  0xfc   : > { %v524_v10 = vpop.f32.mrf.mxu0 }
  0xfe   : > { %v3182_v0 = vpop.f32.mrf.mxu1  ;;  %v3175_v1 = vpop.f32.mrf.mxu0 }
 0x100   : > { %v556_v55 = vpop.f32.mrf.mxu1  ;;  %v527_v30 = vpop.f32.mrf.mxu0 }
 0x102   : > { %v3183_v48 = vpop.f32.mrf.mxu1  ;;  %v3206_v61 = vpop.f32.mrf.mxu0 }
 0x104   : > { %v4376_v63 = vpop.f32.mrf.mxu1  ;;  %v905_v3 = vpop.f32.mrf.mxu0 }
 0x106   : > { %v3188_v7 = vpop.f32.mrf.mxu1  ;;  %v3207_v53 = vpop.f32.mrf.mxu0 }
 0x107   : > { %v681_v15 = vadd.f32 %v3188_v7, %v3170_v60 }
 0x108   : > { %v672_v28 = vpop.f32.mrf.mxu1  ;;  %v908_v22 = vpop.f32.mrf.mxu0 }
 0x109   : > { %v4378_v39 = vadd.f32 %v3206_v61, %v681_v15  ;;  %v673_v42 = vadd.f32 %v672_v28, %v508_v21 }
 0x10a   : > { %v3189_v11 = vpop.f32.mrf.mxu1  ;;  %v3210_v24 = vpop.f32.mrf.mxu0 }
 0x10b   : > { %v4380_v18 = vadd.f32 %v905_v3, %v673_v42  ;;  %v684_v19 = vadd.f32 %v3189_v11, %v3171_v57 }
 0x10c   : > { %v675_v32 = vpop.f32.mrf.mxu1  ;;  %v921_v23 = vpop.f32.mrf.mxu0 }
 0x10d   : > { %v4382_v2 = vadd.f32 %v3207_v53, %v684_v19  ;;  %v676_v51 = vadd.f32 %v675_v32, %v511_v62 }
 0x10e   : > { %v3192_v6 = vpop.f32.mrf.mxu1  ;;  %v3211_v26 = vpop.f32.mrf.mxu0 }
 0x10f   : > { %v4384_v27 = vadd.f32 %v908_v22, %v676_v51  ;;  %v697_v49 = vadd.f32 %v3192_v6, %v3174_v59 }
 0x110   : > { %v688_v31 = vpop.f32.mrf.mxu1  ;;  %v924_v9 = vpop.f32.mrf.mxu0 }
 0x111   : > { %v4386_v25 = vadd.f32 %v3210_v24, %v697_v49  ;;  %v689_v37 = vadd.f32 %v688_v31, %v524_v10 }
 0x112   : > { %v3193_v14 = vpop.f32.mrf.mxu1  ;;  %v3214_v33 = vpop.f32.mrf.mxu0 }
 0x113   : > { %v4388_v58 = vadd.f32 %v921_v23, %v689_v37  ;;  %v700_v41 = vadd.f32 %v3193_v14, %v3175_v1 }
 0x114   : > { %v691_v8 = vpop.f32.mrf.mxu1  ;;  %v937_v16 = vpop.f32.mrf.mxu0 }
 0x115   : > { %v4390_v40 = vadd.f32 %v3211_v26, %v700_v41  ;;  %v692_v29 = vadd.f32 %v691_v8, %v527_v30 }
 0x116   : > { %v3196_v34 = vpop.f32.mrf.mxu1  ;;  %v3215_v17 = vpop.f32.mrf.mxu0 }
 0x117   : > { %v4392_v20 = vadd.f32 %v924_v9, %v692_v29  ;;  %v713_v36 = vadd.f32 %v3196_v34, %v3178_v43 }
 0x118   : > { %v704_v46 = vpop.f32.mrf.mxu1  ;;  %v940_v13 = vpop.f32.mrf.mxu0 }
 0x119   : > { %v4394_v45 = vadd.f32 %v3214_v33, %v713_v36  ;;  %v705_v38 = vadd.f32 %v704_v46, %v540_v35 }
 0x11a   : > { %v3197_v50 = vpop.f32.mrf.mxu1  ;;  %v3218_v4 = vpop.f32.mrf.mxu0 }
 0x11b   : > { %v4396_v12 = vadd.f32 %v937_v16, %v705_v38  ;;  %v716_v5 = vadd.f32 %v3197_v50, %v3179_v54 }
 0x11c   : > { %v707_v52 = vpop.f32.mrf.mxu1  ;;  %v953_v47 = vpop.f32.mrf.mxu0 }
 0x11d   : > { %v4398_v56 = vadd.f32 %v3215_v17, %v716_v5  ;;  %v708_v60 = vadd.f32 %v707_v52, %v543_v44 }
 0x11e   : > { %v3200_v21 = vpop.f32.mrf.mxu1  ;;  %v3219_v57 = vpop.f32.mrf.mxu0 }
 0x11f   : > { %v4400_v62 = vadd.f32 %v940_v13, %v708_v60  ;;  %v729_v43 = vadd.f32 %v3200_v21, %v3182_v0 }
 0x120   : > { %v720_v59 = vpop.f32.mrf.mxu1  ;;  %v956_v10 = vpop.f32.mrf.mxu0 }
 0x121   : > { %v4402_v1 = vadd.f32 %v3218_v4, %v729_v43  ;;  %v721_v35 = vadd.f32 %v720_v59, %v556_v55 }
 0x122   : > { %v3201_v30 = vpop.f32.mrf.mxu1  ;;  %v4404_v61 = vpop.f32.mrf.mxu0 }
 0x123   : > { %v4406_v3 = vadd.f32 %v953_v47, %v721_v35  ;;  %v732_v54 = vadd.f32 %v3201_v30, %v3183_v48 }
 0x124   : > { %v723_v7 = vpop.f32.mrf.mxu1  ;;  %v4408_v53 = vpop.f32.mrf.mxu0 }
 0x125   : > { %4650 = vst [vmem:[#allocation2_spill] sm:$0xff] %v4406_v3  ;;  %v4410_v44 = vadd.f32 %v3219_v57, %v732_v54  ;;  %v724_v15 = vadd.f32 %v723_v7, %v4376_v63 }
 0x126   : > { %v3224_v28 = vpop.f32.mrf.mxu1  ;;  %v4413_v0 = vpop.f32.mrf.mxu0 }
 0x127   : > { %4651 = vst [vmem:[#allocation3_spill] sm:$0xff] %v4410_v44  ;;  %v4415_v22 = vadd.f32 %v956_v10, %v724_v15 }
 0x128   : > { %v1107_v42 = vpop.f32.mrf.mxu1  ;;  %v4417_v55 = vpop.f32.mrf.mxu0 }
 0x129   : > { %4652 = vst [vmem:[#allocation4_spill] sm:$0xff] %v4415_v22 }
 0x12a   : > { %v3225_v11 = vpop.f32.mrf.mxu1  ;;  %v4419_v24 = vpop.f32.mrf.mxu0 }
 0x12c   : > { %v1110_v19 = vpop.f32.mrf.mxu1  ;;  %v4421_v48 = vpop.f32.mrf.mxu0 }
 0x12e   : > { %v4423_v32 = vpop.f32.mrf.mxu1  ;;  %v4425_v23 = vpop.f32.mrf.mxu0 }
 0x130   : > { %v4427_v51 = vpop.f32.mrf.mxu1  ;;  %v4429_v63 = vpop.f32.mrf.mxu0 }
 0x132   : > { %v4431_v6 = vpop.f32.mrf.mxu1  ;;  %v4433_v26 = vpop.f32.mrf.mxu0 }
 0x134   : > { %v4435_v49 = vpop.f32.mrf.mxu1  ;;  %v4437_v31 = vpop.f32.mrf.mxu0 }
 0x136   : > { %v4439_v9 = vpop.f32.mrf.mxu1  ;;  %v4441_v37 = vpop.f32.mrf.mxu0 }
 0x138   : > { %v4443_v14 = vpop.f32.mrf.mxu1  ;;  %v4445_v33 = vpop.f32.mrf.mxu0 }
 0x139   : > { %4653 = vst [vmem:[#allocation5_spill] sm:$0xff] %v4445_v33 }
 0x13a   : > { %v4447_v41 = vpop.f32.mrf.mxu1  ;;  %v4449_v8 = vpop.f32.mrf.mxu0 }
 0x13b   : > { %4654 = vst [vmem:[#allocation6_spill] sm:$0xff] %v4449_v8 }
 0x13c   : > { %v4451_v16 = vpop.f32.mrf.mxu1  ;;  %v4453_v29 = vpop.f32.mrf.mxu0 }
 0x13d   : > { %4655 = vst [vmem:[#allocation7_spill] sm:$0xff] %v4453_v29 }
 0x13e   : > { %v4455_v34 = vpop.f32.mrf.mxu1  ;;  %v4457_v17 = vpop.f32.mrf.mxu0 }
 0x13f   : > { %4656 = vst [vmem:[#allocation8_spill] sm:$0xff] %v4457_v17 }
 0x140   : > { %v4459_v36 = vpop.f32.mrf.mxu1  ;;  %v4461_v46 = vpop.f32.mrf.mxu0 }
 0x141   : > { %4657 = vst [vmem:[#allocation9_spill] sm:$0xff] %v4459_v36  ;;  %4658 = vst [vmem:[#allocation10_spill] sm:$0xff] %v4461_v46 }
 0x142   : > { %v4463_v13 = vpop.f32.mrf.mxu1  ;;  %v3278_v38 = vpop.f32.mrf.mxu0 }
 0x143   : > { %4659 = vst [vmem:[#allocation11_spill] sm:$0xff] %v4463_v13 }
 0x144   : > { %v4465_v50 = vpop.f32.mrf.mxu1  ;;  %v1945_v4 = vpop.f32.mrf.mxu0 }
 0x145   : > { %4660 = vst [vmem:[#allocation12_spill] sm:$0xff] %v4465_v50 }
 0x146   : > { %v3260_v5 = vpop.f32.mrf.mxu1  ;;  %v4467_v52 = vpop.f32.mrf.mxu0 }
 0x148   : > { %v1743_v47 = vpop.f32.mrf.mxu1  ;;  %v4469_v60 = vpop.f32.mrf.mxu0 }
 0x14a   : > { %v3261_v21 = vpop.f32.mrf.mxu1  ;;  %v4471_v57 = vpop.f32.mrf.mxu0 }
 0x14c   : > { %v1746_v43 = vpop.f32.mrf.mxu1  ;;  %v4473_v59 = vpop.f32.mrf.mxu0 }
 0x14e   : > { %v3264_v10 = vpop.f32.mrf.mxu1  ;;  %v4475_v35 = vpop.f32.mrf.mxu0 }
 0x150   : > { %v1759_v30 = vpop.f32.mrf.mxu1  ;;  %v4477_v54 = vpop.f32.mrf.mxu0 }
 0x151   : > { %4661 = vst [vmem:[#allocation13_spill] sm:$0xff] %v4477_v54 }
 0x152   : > { %v4479_v7 = vpop.f32.mrf.mxu1  ;;  %v4481_v15 = vpop.f32.mrf.mxu0 }
 0x153   : > { %4662 = vst [vmem:[#allocation14_spill] sm:$0xff] %v4481_v15  ;;  %v1172_v15 = vadd.f32 %v3224_v28, %v4378_v39  ;;  %v1171_v28 = vadd.f32 %v1110_v19, %v4384_v27 }
 0x154   : > { %v4483_v46 = vpop.f32.mrf.mxu1  ;;  %v4485_v17 = vpop.f32.mrf.mxu0 }
 0x155   : > { %4663 = vst [vmem:[#allocation15_spill] sm:$0xff] %v4485_v17  ;;  %v1170_v17 = vadd.f32 %v1107_v42, %v4380_v18  ;;  %v1176_v18 = vadd.f32 %v4423_v32, %v4386_v25  ;;  %v1553_v27 = vadd.f32 %v4417_v55, %v1171_v28  ;;  %v1177_v25 = vadd.f32 %v4431_v6, %v4390_v40 }
 0x156   : > { %v4487_v50 = vpop.f32.mrf.mxu1  ;;  %v4489_v22 = vpop.f32.mrf.mxu0 }
 0x157   : > { %4664 = vst [vmem:[#allocation16_spill] sm:$0xff] %v4489_v22  ;;  %v1552_v39 = vadd.f32 %v4408_v53, %v1170_v17 }
 0x158   : > { %v4491_v29 = vpop.f32.mrf.mxu1  ;;  %v4493_v13 = vpop.f32.mrf.mxu0 }
 0x159   : > { %4665 = vst [vmem:[#allocation17_spill] sm:$0xff] %v4493_v13  ;;  %v1554_v13 = vadd.f32 %v4404_v61, %v1172_v15 }
 0x15a   : > { %v4496_v44 = vpop.f32.mrf.mxu1  ;;  %v4498_v8 = vpop.f32.mrf.mxu0 }
 0x15b   : > { %4666 = vst [vmem:[#allocation18_spill] sm:$0xff] %v4496_v44  ;;  %4667 = vst [vmem:[#allocation19_spill] sm:$0xff] %v4498_v8  ;;  %v1173_v44 = vadd.f32 %v3225_v11, %v4382_v2  ;;  %v1806_v2 = vadd.f32 %v1743_v47, %v1552_v39  ;;  %v1174_v11 = vadd.f32 %v4427_v51, %v4388_v58 }
 0x15c   : > { %v4501_v36 = vpop.f32.mrf.mxu1  ;;  %v4503_v3 = vpop.f32.mrf.mxu0  ;;  %v1175_v51 = vadd.f32 %v4435_v49, %v4392_v20 }
 0x15d   : > { %4668 = vst [vmem:[#allocation20_spill] sm:$0xff] %v4503_v3  ;;  %v1808_v3 = vadd.f32 %v3260_v5, %v1554_v13  ;;  %v1555_v61 = vadd.f32 %v4413_v0, %v1173_v44  ;;  %v1558_v13 = vadd.f32 %v4419_v24, %v1176_v18  ;;  %v2008_v44 = vadd.f32 %v1945_v4, %v1806_v2 }
 0x15e   : > { %v4506_v22 = vpop.f32.mrf.mxu1  ;;  %v4508_v33 = vpop.f32.mrf.mxu0  ;;  %v1807_v0 = vadd.f32 %v1746_v43, %v1553_v27  ;;  %v1556_v58 = vadd.f32 %v4421_v48, %v1174_v11  ;;  %v1559_v4 = vadd.f32 %v4425_v23, %v1177_v25  ;;  %v1180_v48 = vadd.f32 %v4439_v9, %v4394_v45 }
 0x15f   : > { %4669 = vst [vmem:[#allocation21_spill] sm:$0xff] %v4508_v33  ;;  %v2010_v19 = vadd.f32 %v3278_v38, %v1808_v3  ;;  %v1809_v17 = vadd.f32 %v3261_v21, %v1555_v61  ;;  %v1812_v39 = vadd.f32 %v3264_v10, %v1558_v13  ;;  %v4538_v3 = vld [vmem:[%s4644_s2] ss:$0 sm:$0xff]  ;;  %v1557_v23 = vadd.f32 %v4429_v63, %v1175_v51  ;;  %v4671_v51 = vld [vmem:[#allocation5_spill] sm:$0xff] }
 0x160   : > { %v4512_v54 = vpop.f32.mrf.mxu1  ;;  %v4514_v8 = vpop.f32.mrf.mxu0  ;;  %v1810_v21 = vadd.f32 %v1759_v30, %v1556_v58  ;;  %v2009_v43 = vadd.f32 %v4469_v60, %v1807_v0  ;;  %v1178_v45 = vadd.f32 %v4443_v14, %v4396_v12  ;;  %v1813_v18 = vadd.f32 %v4479_v7, %v1559_v4 }
 0x161   : > { %v2011_v40 = vadd.f32 %v4467_v52, %v1809_v17  ;;  %v2014_v9 = vadd.f32 %v4471_v57, %v1812_v39  ;;  %v1562_v11 = vadd.f32 %v4433_v26, %v1180_v48  ;;  %v1181_v63 = vadd.f32 %v4447_v41, %v4398_v56 }
 0x162   : > { %v4521_v42 = vpop.f32.mrf.mxu1  ;;  %v3314_v33 = vpop.f32.mrf.mxu0  ;;  %v1811_v57 = vadd.f32 %v4483_v46, %v1557_v23  ;;  %v1560_v17 = vadd.f32 %v4437_v31, %v1178_v45  ;;  %v1179_v26 = vadd.f32 %v4451_v16, %v4400_v62  ;;  %v1184_v31 = vadd.f32 %v4455_v34, %v4402_v1 }
 0x163   : > { %v1816_v13 = vadd.f32 %v4487_v50, %v1562_v11  ;;  %v4670_v50 = vld [vmem:[#allocation13_spill] sm:$0xff]  ;;  %v4681_v11 = vld [vmem:[#allocation4_spill] sm:$0xff] }
 0x164   : > { %v4526_v15 = vpop.f32.mrf.mxu1  ;;  %v2581_v53 = vpop.f32.mrf.mxu0  ;;  %v2013_v0 = vadd.f32 %v4670_v50, %v1811_v57  ;;  %v1561_v39 = vadd.f32 %v4671_v51, %v1179_v26  ;;  %v4684_v26 = vld [vmem:[#allocation8_spill] sm:$0xff] }
 0x166   : > { %v3296_v32 = vpop.f32.mrf.mxu1  ;;  %v3315_v5 = vpop.f32.mrf.mxu0 }
 0x167   : > { %v2392_v47 = vadd.f32 %v3296_v32, %v2010_v19 }
 0x168   : > { %v2327_v55 = vpop.f32.mrf.mxu1  ;;  %v2584_v24 = vpop.f32.mrf.mxu0 }
 0x169   : > { %v2646_v6 = vadd.f32 %v3314_v33, %v2392_v47  ;;  %v2390_v38 = vadd.f32 %v2327_v55, %v2008_v44  ;;  %v1814_v44 = vadd.f32 %v4491_v29, %v1560_v17  ;;  %v4672_v55 = vld [vmem:[#allocation2_spill] sm:$0xff] }
 0x16a   : > { %v3297_v20 = vpop.f32.mrf.mxu1  ;;  %v3318_v49 = vpop.f32.mrf.mxu0  ;;  %v4675_v29 = vld [vmem:[#allocation18_spill] sm:$0xff] }
 0x16b   : > { %v2669_v52 = vadd.f32 %v4538_v3, %v2646_v6  ;;  %v2644_v33 = vadd.f32 %v2581_v53, %v2390_v38  ;;  %v2393_v10 = vadd.f32 %v3297_v20, %v2011_v40  ;;  %v2012_v53 = vadd.f32 %v4473_v59, %v1810_v21  ;;  %v4674_v40 = vld [vmem:[#allocation14_spill] sm:$0xff] }
 0x16c   : > { %v2330_v30 = vpop.f32.mrf.mxu1  ;;  %v2597_v28 = vpop.f32.mrf.mxu0  ;;  %v2015_v59 = vadd.f32 %v4475_v35, %v1813_v18  ;;  %v2018_v6 = vadd.f32 %v4674_v40, %v1816_v13  ;;  %v4676_v20 = vld [vmem:[#allocation6_spill] sm:$0xff] }
 0x16d   : > { %2685 = vst [vmem:[%s4547_s29 + $0x10] sm:$0xff] %v2669_v52  ;;  %v2667_v61 = vadd.f32 %v4538_v3, %v2644_v33  ;;  %v2647_v60 = vadd.f32 %v3315_v5, %v2393_v10  ;;  %v2391_v2 = vadd.f32 %v2330_v30, %v2009_v43  ;;  %v1563_v5 = vadd.f32 %v4441_v37, %v1181_v63  ;;  %v4677_v43 = vld [vmem:[#allocation3_spill] sm:$0xff]  ;;  %v4682_v63 = vld [vmem:[#allocation12_spill] sm:$0xff] }
 0x16e   : > { %v3300_v12 = vpop.f32.mrf.mxu1  ;;  %v3319_v14 = vpop.f32.mrf.mxu0  ;;  %v4678_v52 = vld [vmem:[#allocation11_spill] sm:$0xff]  ;;  %v1815_v30 = vadd.f32 %v4501_v36, %v1561_v39 }
 0x16f   : > { %2683 = vst [vmem:[%s4547_s29] sm:$0xff] %v2667_v61  ;;  %v2670_v7 = vadd.f32 %v4538_v3, %v2647_v60  ;;  %v2645_v27 = vadd.f32 %v2584_v24, %v2391_v2  ;;  %v2396_v19 = vadd.f32 %v3300_v12, %v2014_v9  ;;  %v4673_v24 = vld [vmem:[#allocation9_spill] sm:$0xff]  ;;  %v1817_v38 = vadd.f32 %v4675_v29, %v1563_v5  ;;  %v4679_v10 = vld [vmem:[#allocation15_spill] sm:$0xff] }
 0x170   : > { %v2343_v56 = vpop.f32.mrf.mxu1  ;;  %v2600_v41 = vpop.f32.mrf.mxu0  ;;  %v1182_v37 = vadd.f32 %v4673_v24, %v4672_v55  ;;  %v1185_v33 = vadd.f32 %v4678_v52, %v4677_v43  ;;  %v2016_v23 = vadd.f32 %v4679_v10, %v1814_v44  ;;  %v4680_v60 = vld [vmem:[#allocation7_spill] sm:$0xff] }
 0x171   : > { %2686 = vst [vmem:[%s4547_s29 + $0x18] sm:$0xff] %v2670_v7  ;;  %v2668_v46 = vadd.f32 %v4538_v3, %v2645_v27  ;;  %v2650_v25 = vadd.f32 %v3318_v49, %v2396_v19  ;;  %v2394_v32 = vadd.f32 %v2343_v56, %v2012_v53  ;;  %v1566_v49 = vadd.f32 %v4676_v20, %v1184_v31  ;;  %v4683_v7 = vld [vmem:[#allocation16_spill] sm:$0xff]  ;;  %v4686_v31 = vld [vmem:[#allocation10_spill] sm:$0xff] }
 0x172   : > { %v3301_v62 = vpop.f32.mrf.mxu1  ;;  %v3322_v16 = vpop.f32.mrf.mxu0  ;;  %v1564_v2 = vadd.f32 %v4680_v60, %v1182_v37  ;;  %v1183_v53 = vadd.f32 %v4682_v63, %v4681_v11  ;;  %v2019_v27 = vadd.f32 %v4683_v7, %v1817_v38  ;;  %v1567_v13 = vadd.f32 %v4684_v26, %v1185_v33 }
 0x173   : > { %2684 = vst [vmem:[%s4547_s29 + $0x8] sm:$0xff] %v2668_v46  ;;  %v2673_v35 = vadd.f32 %v4538_v3, %v2650_v25  ;;  %v2648_v47 = vadd.f32 %v2597_v28, %v2394_v32  ;;  %v2397_v58 = vadd.f32 %v3301_v62, %v2015_v59  ;;  %v1820_v12 = vadd.f32 %v4506_v22, %v1566_v49  ;;  %v4685_v46 = vld [vmem:[#allocation17_spill] sm:$0xff]  ;;  %v4687_v62 = vld [vmem:[#allocation19_spill] sm:$0xff] }
 0x174   : > { %v2346_v1 = vpop.f32.mrf.mxu1  ;;  %v2613_v34 = vpop.f32.mrf.mxu0  ;;  %v1818_v56 = vadd.f32 %v4512_v54, %v1564_v2  ;;  %v2017_v25 = vadd.f32 %v4685_v46, %v1815_v30  ;;  %v1565_v44 = vadd.f32 %v4686_v31, %v1183_v53 }
 0x175   : > { %2689 = vst [vmem:[%s4547_s29 + $0x30] sm:$0xff] %v2673_v35  ;;  %v2671_v4 = vadd.f32 %v4538_v3, %v2648_v47  ;;  %v2651_v48 = vadd.f32 %v3319_v14, %v2397_v58  ;;  %v2395_v21 = vadd.f32 %v2346_v1, %v2013_v0  ;;  %v2022_v50 = vadd.f32 %v4687_v62, %v1820_v12  ;;  %v4688_v58 = vld [vmem:[#allocation20_spill] sm:$0xff] }
 0x176   : > { %v3304_v45 = vpop.f32.mrf.mxu1  ;;  %v3323_v9 = vpop.f32.mrf.mxu0  ;;  %v1821_v0 = vadd.f32 %v4521_v42, %v1567_v13  ;;  %v2020_v51 = vadd.f32 %v4688_v58, %v1818_v56  ;;  %v1819_v24 = vadd.f32 %v4526_v15, %v1565_v44  ;;  %v4689_v42 = vld [vmem:[#allocation21_spill] sm:$0xff] }
 0x177   : > { %2687 = vst [vmem:[%s4547_s29 + $0x20] sm:$0xff] %v2671_v4  ;;  %v2674_v28 = vadd.f32 %v4538_v3, %v2651_v48  ;;  %v2649_v18 = vadd.f32 %v2600_v41, %v2395_v21  ;;  %v2400_v61 = vadd.f32 %v3304_v45, %v2018_v6 }
 0x178   : > { %v2359_v14 = vpop.f32.mrf.mxu1  ;;  %v2616_v57 = vpop.f32.mrf.mxu0  ;;  %v2021_v15 = vadd.f32 %v4514_v8, %v1819_v24 }
 0x179   : > { %2690 = vst [vmem:[%s4547_s29 + $0x38] sm:$0xff] %v2674_v28  ;;  %v2672_v36 = vadd.f32 %v4538_v3, %v2649_v18  ;;  %v2654_v19 = vadd.f32 %v3322_v16, %v2400_v61  ;;  %v2398_v17 = vadd.f32 %v2359_v14, %v2016_v23 }
 0x17a   : > { %v3305_v41 = vpop.f32.mrf.mxu1  ;;  %v3326_v59 = vpop.f32.mrf.mxu0 }
 0x17b   : > { %2688 = vst [vmem:[%s4547_s29 + $0x28] sm:$0xff] %v2672_v36  ;;  %v2677_v22 = vadd.f32 %v4538_v3, %v2654_v19  ;;  %v2652_v32 = vadd.f32 %v2613_v34, %v2398_v17  ;;  %v2401_v5 = vadd.f32 %v3305_v41, %v2019_v27  ;;  %v2023_v34 = vadd.f32 %v4689_v42, %v1821_v0 }
 0x17c   : > { %v2362_v16 = vpop.f32.mrf.mxu1  ;;  %v2629_v55 = vpop.f32.mrf.mxu0 }
 0x17d   : > { %2693 = vst [vmem:[%s4547_s29 + $0x50] sm:$0xff] %v2677_v22  ;;  %v2675_v54 = vadd.f32 %v4538_v3, %v2652_v32  ;;  %v2655_v35 = vadd.f32 %v3323_v9, %v2401_v5  ;;  %v2399_v47 = vadd.f32 %v2362_v16, %v2017_v25 }
 0x17e   : > { %v3308_v39 = vpop.f32.mrf.mxu1  ;;  %v3327_v21 = vpop.f32.mrf.mxu0 }
 0x17f   : > { %2691 = vst [vmem:[%s4547_s29 + $0x40] sm:$0xff] %v2675_v54  ;;  %v2678_v37 = vadd.f32 %v4538_v3, %v2655_v35  ;;  %v2653_v40 = vadd.f32 %v2616_v57, %v2399_v47  ;;  %v2404_v6 = vadd.f32 %v3308_v39, %v2022_v50 }
 0x180   : > { %v2375_v1 = vpop.f32.mrf.mxu1  ;;  %v2632_v45 = vpop.f32.mrf.mxu0 }
 0x181   : > { %2694 = vst [vmem:[%s4547_s29 + $0x58] sm:$0xff] %v2678_v37  ;;  %v2676_v29 = vadd.f32 %v4538_v3, %v2653_v40  ;;  %v2658_v38 = vadd.f32 %v3326_v59, %v2404_v6  ;;  %v2402_v4 = vadd.f32 %v2375_v1, %v2020_v51 }
 0x182   : > { %v3309_v48 = vpop.f32.mrf.mxu1 }
 0x183   : > { %2692 = vst [vmem:[%s4547_s29 + $0x48] sm:$0xff] %v2676_v29  ;;  %v2681_v20 = vadd.f32 %v4538_v3, %v2658_v38  ;;  %v2656_v49 = vadd.f32 %v2629_v55, %v2402_v4  ;;  %v2405_v43 = vadd.f32 %v3309_v48, %v2023_v34 }
 0x184   : > { %v2378_v52 = vpop.f32.mrf.mxu1 }
 0x185   : > { %2697 = vst [vmem:[%s4547_s29 + $0x70] sm:$0xff] %v2681_v20  ;;  %v2679_v33 = vadd.f32 %v4538_v3, %v2656_v49  ;;  %v2659_v10 = vadd.f32 %v3327_v21, %v2405_v43  ;;  %v2403_v23 = vadd.f32 %v2378_v52, %v2021_v15 }
 0x187   : > { %2695 = vst [vmem:[%s4547_s29 + $0x60] sm:$0xff] %v2679_v33  ;;  %v2682_v9 = vadd.f32 %v4538_v3, %v2659_v10  ;;  %v2657_v30 = vadd.f32 %v2632_v45, %v2403_v23 }
 0x189   : > { %2698 = vst [vmem:[%s4547_s29 + $0x78] sm:$0xff] %v2682_v9  ;;  %v2680_v8 = vadd.f32 %v4538_v3, %v2657_v30 }
 0x18b   : > { %2696 = vst [vmem:[%s4547_s29 + $0x68] sm:$0xff] %v2680_v8 }
 0x18c PF: > { %s13_s16 = sadd.s32 1, %s3443_s16   ;;  %s4690_s12 = smov %s3435_s14 }
 0x18d   : > { %p10_p7 = scmp.ge.s32.totalorder %s13_s16, 6   ;;  %s4691_s13 = smov %s3439_s15 }
 0x18e   : > { %s4692_s14 = smov %s4695_s17  ;;  %s4693_s15 = smov %s4699_s18 }
 0x18f   :  { %12 = sbr.rel (!%p10_p7) target bundleno = 3 (0x3), region = 73 }

</bundles_post_ra>
